<compile_context>
chip_gen: v7x
topology: tpu7x:2x2x1
jax: 0.10.0
libtpu: 0.0.40
codegen_flags: <defaults>
</compile_context>

<pallas_src>
import functools

import numpy as np
import jax
import jax.numpy as jnp
from jax.experimental import pallas as pl
from jax.experimental.pallas import tpu as pltpu


def _round_up(x, m):
    return (x + m - 1) // m * m


# ------------------------------ kernel ------------------------------------ #

def _vocoder_kernel(wmain_ref, whalo_ref, dft_ref, fb_ref, wct_ref,   # inputs
                    mel_ref, audio_ref,                               # outputs
                    carry_ref,                                        # scratch
                    *, nf_pad, hop, win, tile_l, n_frames):
    """One (waveform, frame-tile) grid step.

    wmain_ref : (tile_l, hop)       f32  waveform rows lt*tile_l .. +tile_l
    whalo_ref : (nck-1, hop)        f32  next nck-1 waveform rows (halo)
    dft_ref   : (n_fft, 2*nf_pad)   bf16 [hann*cos | hann*sin], zero padded
    fb_ref    : (nf_pad, nm_pad)    bf16 HTK mel filterbank, zero padded
    wct_ref   : (nm_pad, win)       bf16 ConvTranspose1d weight, zero padded
    mel_ref   : (tile_l, nm_pad)    f32  mel rows for this tile
    audio_ref : (tile_l, hop)       f32  finished overlap-add rows (pipelined)
    carry_ref : (nck-1, hop)        f32  overlap carried into the next tile
    """
    lt = pl.program_id(1)
    nck = win // hop

    def zpad_rows(a, top, bottom):
        parts = []
        if top:
            parts.append(jnp.zeros((top, hop), a.dtype))
        parts.append(a)
        if bottom:
            parts.append(jnp.zeros((bottom, hop), a.dtype))
        return jnp.concatenate(parts, axis=0) if len(parts) > 1 else a

    @pl.when(lt == 0)
    def _init_carry():
        carry_ref[...] = jnp.zeros_like(carry_ref)

    # ---- build the (tile_l, n_fft) frame matrix from hop-wide waveform rows
    ext = jnp.concatenate([wmain_ref[...], whalo_ref[...]], axis=0)   # (tile_l+nck-1, hop)
    frames = jnp.concatenate(
        [ext[s:s + tile_l, :] for s in range(nck)], axis=1)           # (tile_l, win)
    frames = frames.astype(jnp.bfloat16)

    # ---- windowed DFT: ONE wide bf16 MXU matmul, f32 accumulation ----
    dft = jnp.dot(frames, dft_ref[...], preferred_element_type=jnp.float32)
    re = dft[:, :nf_pad]                                              # lane-aligned split
    im = dft[:, nf_pad:]
    # |STFT| (power=1): audio-diffusion-pytorch's MelSpectrogram takes abs of
    # the complex STFT.  sqrt of the padded zero columns is exact zero and the
    # EUP is far from the critical unit at tile_l=128, so no n_freq slice.
    mag = jnp.sqrt(re * re + im * im)

    # ---- mel filterbank (bf16 MXU, f32 accumulate) ----
    mel = jnp.dot(mag.astype(jnp.bfloat16), fb_ref[...],
                  preferred_element_type=jnp.float32)                 # (tile_l, nm_pad)

    # zero rows beyond the true frame count: padding frames would otherwise
    # read real waveform samples near the tail and corrupt the overlap-add.
    row = jax.lax.broadcasted_iota(jnp.int32, mel.shape, 0)
    mel = jnp.where(row < n_frames - lt * tile_l, mel, 0.0)
    mel_ref[...] = mel

    # ---- ConvTranspose1d weights per frame ----
    contrib = jnp.dot(mel.astype(jnp.bfloat16), wct_ref[...],
                      preferred_element_type=jnp.float32)             # (tile_l, win)

    # ---- overlap-add on VALUES: acc[i+s, j] = sum_s contrib[i, s*hop+j] ----
    acc = zpad_rows(contrib[:, :hop], 0, nck - 1)                     # (tile_l+nck-1, hop)
    for s in range(1, nck):                                           # static unroll
        acc = acc + zpad_rows(contrib[:, s * hop:(s + 1) * hop], s, nck - 1 - s)

    # finished rows for this tile = head of acc + carry from the previous tile
    audio_ref[...] = acc[:tile_l, :] + zpad_rows(carry_ref[...], 0,
                                                 tile_l - (nck - 1))
    # rows spilling into the next tile become the new carry
    carry_ref[...] = acc[tile_l:, :]


# ------------------------------ params ------------------------------------ #

def make_params(*, n_fft, hop, win, n_mel, T, sample_rate=16000, key=None):
    assert win == n_fft, "module default: mel_win_length == mel_n_fft"
    assert win % hop == 0 and win > hop, "overlap-add carry needs hop | win, win > hop"
    n_freq = n_fft // 2 + 1
    nf_pad = _round_up(n_freq, 128)       # lane-aligned re/im split; 2*nf_pad % 128 == 0
    nm_pad = _round_up(n_mel, 128)        # lane-dense mel output / MXU N dim

    # periodic Hann window, folded directly into the DFT matrices (exact)
    window = (0.5 - 0.5 * np.cos(2.0 * np.pi * np.arange(win) / win)).astype(np.float32)
    n = np.arange(n_fft)[:, None]
    f = np.arange(n_freq)[None, :]
    ang = 2.0 * np.pi * n * f / n_fft
    dft = np.zeros((n_fft, 2 * nf_pad), np.float32)
    dft[:, :n_freq] = window[:, None] * np.cos(ang)
    dft[:, nf_pad:nf_pad + n_freq] = window[:, None] * np.sin(ang)

    # HTK triangular mel filterbank (torchaudio MelScale defaults: htk, norm=None)
    hz2mel = lambda hz: 2595.0 * np.log10(1.0 + hz / 700.0)
    mel2hz = lambda m: 700.0 * (10.0 ** (m / 2595.0) - 1.0)
    m_pts = np.linspace(hz2mel(0.0), hz2mel(sample_rate / 2.0), n_mel + 2)
    f_pts = mel2hz(m_pts)
    freqs = np.arange(n_freq) * (sample_rate / n_fft)
    up = (freqs[:, None] - f_pts[None, :-2]) / (f_pts[1:-1] - f_pts[:-2])[None, :]
    down = (f_pts[None, 2:] - freqs[:, None]) / (f_pts[2:] - f_pts[1:-1])[None, :]
    mel_fb = np.maximum(0.0, np.minimum(up, down)).astype(np.float32)   # (n_freq, n_mel)
    fb_pad = np.zeros((nf_pad, nm_pad), np.float32)
    fb_pad[:n_freq, :n_mel] = mel_fb

    # ConvTranspose1d(n_mel, 1, k=win, stride=hop, padding=(win-hop)//2, bias=False)
    wT = np.asarray(jax.random.normal(key, (n_mel, win), dtype=jnp.float32) * 0.05)
    wct_pad = np.zeros((nm_pad, win), np.float32)
    wct_pad[:n_mel, :] = wT

    # HiFi-GAN style centering used by audio-diffusion-pytorch's MelSpectrogram:
    # explicit reflect pad of (n_fft - hop)//2 per side + center=False STFT
    # -> L = T // hop and the flat output length equals T (matches x for the
    # channel-append in the diffusion net).
    pad_stft = (n_fft - hop) // 2
    L = (T + 2 * pad_stft - n_fft) // hop + 1
    pad_ct = (win - hop) // 2
    T_out = (L - 1) * hop - 2 * pad_ct + win

    return dict(
        dft=jnp.asarray(dft, jnp.bfloat16),
        mel_fb_pad=jnp.asarray(fb_pad, jnp.bfloat16),
        wct_pad=jnp.asarray(wct_pad, jnp.bfloat16),
        # f32 originals kept only for the numpy reference check
        window=window, mel_fb=mel_fb, wT=wT,
        n_fft=n_fft, hop=hop, win=win, n_mel=n_mel, n_freq=n_freq,
        nf_pad=nf_pad, nm_pad=nm_pad,
        pad_stft=pad_stft, pad_ct=pad_ct, L=L, T_out=T_out,
    )


# ------------------------------ wrapper ------------------------------------ #

def diffusion_vocoder_forward(x, params, *, tile_l=128):
    """x: (B, C, T) float32 waveform.

    Returns (x_flat, spectrogram, spectrogram_flat) — exactly the tensors the
    PyTorch forward feeds into the diffusion objective.
    tile_l: 128 default; sweep 256 on v6e/v7x (bigger M for the 256-row MXU).
    """
    B, C, T = x.shape
    BC = B * C
    n_fft, hop, win = params["n_fft"], params["hop"], params["win"]
    n_mel, nf_pad, nm_pad = params["n_mel"], params["nf_pad"], params["nm_pad"]
    L, T_out = params["L"], params["T_out"]
    pad_stft, pad_ct = params["pad_stft"], params["pad_ct"]
    nck = win // hop
    assert tile_l % 8 == 0 and tile_l >= nck

    n_lt = pl.cdiv(L + nck - 1, tile_l)      # emitted rows must cover L + nck - 1
    l_pad = n_lt * tile_l
    n_wrows = l_pad + nck - 1                # waveform rows the kernel may read

    # --- hop-wide waveform rows (cheap XLA layout glue; ~1x waveform traffic) ---
    x2 = x.reshape(BC, T)
    xp = jnp.pad(x2, ((0, 0), (pad_stft, pad_stft)), mode="reflect")
    tail = n_wrows * hop - xp.shape[1]
    assert tail >= 0
    xp = jnp.pad(xp, ((0, 0), (0, tail)))
    w_rows = xp.reshape(BC, n_wrows, hop)                      # f32 (fidelity; cast in-kernel)
    w_main = w_rows[:, :l_pad, :]                              # (BC, l_pad, hop)
    halo_idx = (np.arange(n_lt)[:, None] + 1) * tile_l + np.arange(nck - 1)[None, :]
    w_halo = w_rows[:, halo_idx, :]                            # (BC, n_lt, nck-1, hop)

    kernel = functools.partial(_vocoder_kernel, nf_pad=nf_pad, hop=hop,
                               win=win, tile_l=tile_l, n_frames=L)

    R = BC * l_pad
    flops = 2 * R * (n_fft * 2 * nf_pad + nf_pad * nm_pad + nm_pad * win)
    bytes_accessed = (BC * l_pad * hop * 4 + BC * n_lt * (nck - 1) * hop * 4
                      + int(params["dft"].size) * 2
                      + int(params["mel_fb_pad"].size) * 2
                      + int(params["wct_pad"].size) * 2
                      + R * nm_pad * 4 + BC * l_pad * hop * 4)

    mel_rows, audio = pl.pallas_call(
        kernel,
        grid=(BC, n_lt),
        in_specs=[
            pl.BlockSpec((None, tile_l, hop), lambda b, l: (b, l, 0)),
            pl.BlockSpec((None, None, nck - 1, hop), lambda b, l: (b, l, 0, 0)),
            # constant-index weights: DMA'd once, held resident across the grid.
            # TODO(synk): pipeline_mode=pl.Buffered(1) on these for v7x's 64 MiB
            # VMEM re-budget (saves the redundant second buffer of dft).
            pl.BlockSpec((n_fft, 2 * nf_pad), lambda b, l: (0, 0)),
            pl.BlockSpec((nf_pad, nm_pad), lambda b, l: (0, 0)),
            pl.BlockSpec((nm_pad, win), lambda b, l: (0, 0)),
        ],
        out_specs=[
            pl.BlockSpec((None, tile_l, nm_pad), lambda b, l: (b, l, 0)),
            pl.BlockSpec((None, tile_l, hop), lambda b, l: (b, l, 0)),
        ],
        out_shape=(
            jax.ShapeDtypeStruct((BC, l_pad, nm_pad), jnp.float32),
            jax.ShapeDtypeStruct((BC, l_pad, hop), jnp.float32),
        ),
        scratch_shapes=[pltpu.VMEM((nck - 1, hop), jnp.float32)],
        compiler_params=pltpu.CompilerParams(
            dimension_semantics=("parallel", "arbitrary"),
            vmem_limit_bytes=32 * 1024 * 1024,
        ),
        cost_estimate=pl.CostEstimate(
            flops=flops,
            transcendentals=R * nf_pad,
            bytes_accessed=bytes_accessed,
        ),
    )(w_main, w_halo, params["dft"], params["mel_fb_pad"], params["wct_pad"])

    # strip padding / rearrange (cheap XLA glue)
    spectrogram = jnp.transpose(mel_rows[:, :L, :n_mel], (0, 2, 1))   # (BC, n_mel, L)
    flat_full = audio.reshape(BC, l_pad * hop)
    spectrogram_flat = flat_full[:, pad_ct:pad_ct + T_out].reshape(BC, 1, T_out)
    x_flat = x.reshape(BC, 1, T)
    # TODO(synk): super().forward() (VDiffusion loss through the user-supplied
    # net_t with random sigmas / noise) has no deterministic Pallas equivalent;
    # we return exactly the tensors fed into it instead.
    return x_flat, spectrogram, spectrogram_flat


# ------------------------------- demo -------------------------------------- #

if __name__ == "__main__":
    # Small shapes; B*C=4 keeps the parallel axis even (v7x) and T is big
    # enough that two frame tiles are needed -> the carry path is exercised.
    B, C, T = 2, 2, 1024
    n_fft, n_mel = 32, 8
    hop = n_fft // 4          # mel_hop_length default
    win = n_fft               # mel_win_length default

    key = jax.random.PRNGKey(0)
    kx, kw = jax.random.split(key)
    x = jax.random.normal(kx, (B, C, T), dtype=jnp.float32)
    params = make_params(n_fft=n_fft, hop=hop, win=win, n_mel=n_mel, T=T, key=kw)
    assert params["T_out"] == T

    x_flat, spectrogram, spectrogram_flat = diffusion_vocoder_forward(x, params)
    jax.block_until_ready((x_flat, spectrogram, spectrogram_flat))

    # ----- numpy reference (f32 STFT via np.fft + explicit conv-transpose) -----
    BC, L, T_out = B * C, params["L"], params["T_out"]
    pad_stft, pad_ct = params["pad_stft"], params["pad_ct"]
    xn = np.asarray(x).reshape(BC, T)
    xpn = np.pad(xn, ((0, 0), (pad_stft, pad_stft)), mode="reflect")
    frames_n = np.stack([xpn[:, l * hop:l * hop + n_fft] for l in range(L)], axis=1)
    fw = frames_n * params["window"]
    spec_n = np.abs(np.fft.rfft(fw, n=n_fft, axis=-1))                 # (BC, L, n_freq)
    mel_n = spec_n @ params["mel_fb"]                                  # (BC, L, n_mel)
    spec_ref = np.transpose(mel_n, (0, 2, 1))                          # (BC, n_mel, L)
    W = params["wT"]                                                   # (n_mel, win)
    flat_ref = np.zeros((BC, T_out), np.float32)
    for l in range(L):
        contrib_l = mel_n[:, l, :] @ W                                 # (BC, win)
        for k in range(win):
            t = l * hop - pad_ct + k
            if 0 <= t < T_out:
                flat_ref[:, t] += contrib_l[:, k]

    # bf16 MXU operands (f32 accumulation) -> loosened tolerances vs f32 ref
    np.testing.assert_allclose(np.asarray(spectrogram), spec_ref, rtol=5e-2, atol=5e-2)
    np.testing.assert_allclose(np.asarray(spectrogram_flat)[:, 0, :], flat_ref,
                               rtol=5e-2, atol=5e-2)
    assert x_flat.shape == (BC, 1, T)
    print("KERNEL_OK")
</pallas_src>

<mosaic_0001>
module attributes {stable_mosaic.version = 11 : i64} {
  func.func @_vocoder_kernel(%arg0: i32, %arg1: i32, %arg2: memref<1x128x8xf32, #tpu.memory_space<vmem>>, %arg3: memref<1x1x3x8xf32, #tpu.memory_space<vmem>>, %arg4: memref<32x256xbf16, #tpu.memory_space<vmem>>, %arg5: memref<128x128xbf16, #tpu.memory_space<vmem>>, %arg6: memref<128x32xbf16, #tpu.memory_space<vmem>>, %arg7: memref<1x128x128xf32, #tpu.memory_space<vmem>>, %arg8: memref<1x128x8xf32, #tpu.memory_space<vmem>>, %arg9: memref<3x8xf32, #tpu.memory_space<vmem>>) attributes {dimension_semantics = [#tpu.dimension_semantics<parallel>, #tpu.dimension_semantics<arbitrary>], iteration_bounds = array<i64: 4, 2>, scalar_prefetch = 0 : i64, scratch_operands = 1 : i64, tpu.core_type = #tpu.core_type<tc>, window_params = [{transform_indices = @transform_0, window_bounds = array<i64: 1, 128, 8>}, {transform_indices = @transform_1, window_bounds = array<i64: 1, 1, 3, 8>}, {pipeline_mode = #tpu.pipeline_mode<synchronous>, transform_indices = @transform_2, window_bounds = array<i64: 32, 256>}, {pipeline_mode = #tpu.pipeline_mode<synchronous>, transform_indices = @transform_3, window_bounds = array<i64: 128, 128>}, {pipeline_mode = #tpu.pipeline_mode<synchronous>, transform_indices = @transform_4, window_bounds = array<i64: 128, 32>}, {transform_indices = @transform_5, window_bounds = array<i64: 1, 128, 128>}, {transform_indices = @transform_6, window_bounds = array<i64: 1, 128, 8>}]} {
    %c0_i32 = arith.constant 0 : i32
    %0 = arith.cmpi eq, %arg1, %c0_i32 : i32
    %1 = arith.extui %0 : i1 to i32
    %c0_i32_0 = arith.constant 0 : i32
    %2 = arith.cmpi ne, %1, %c0_i32_0 : i32
    scf.if %2 {
      %cst_34 = arith.constant 0.000000e+00 : f32
      %65 = vector.broadcast %cst_34 : f32 to vector<3x8xf32>
      %c0_35 = arith.constant 0 : index
      %c0_36 = arith.constant 0 : index
      %66 = vector.load %arg9[%c0_35, %c0_36] : memref<3x8xf32, #tpu.memory_space<vmem>>, vector<3x8xf32>
      tpu.vector_store %arg9[%c0_35, %c0_36], %65 {strides = array<i32>} : memref<3x8xf32, #tpu.memory_space<vmem>>, vector<3x8xf32>,
    } else {
    }
    %c0 = arith.constant 0 : index
    %c0_1 = arith.constant 0 : index
    %c0_2 = arith.constant 0 : index
    %3 = vector.load %arg2[%c0, %c0_1, %c0_2] : memref<1x128x8xf32, #tpu.memory_space<vmem>>, vector<1x128x8xf32>
    %4 = vector.shape_cast %3 : vector<1x128x8xf32> to vector<128x8xf32>
    %c0_3 = arith.constant 0 : index
    %c0_4 = arith.constant 0 : index
    %c0_5 = arith.constant 0 : index
    %c0_6 = arith.constant 0 : index
    %5 = vector.load %arg3[%c0_3, %c0_4, %c0_5, %c0_6] : memref<1x1x3x8xf32, #tpu.memory_space<vmem>>, vector<1x1x3x8xf32>
    %6 = vector.shape_cast %5 : vector<1x1x3x8xf32> to vector<3x8xf32>
    %7 = tpu.concatenate %4, %6 in 0 : vector<128x8xf32>, vector<3x8xf32> -> vector<131x8xf32>
    %8 = vector.extract_strided_slice %7 {offsets = [0, 0], sizes = [128, 8], strides = [1, 1]} : vector<131x8xf32> to vector<128x8xf32>
    %9 = vector.extract_strided_slice %7 {offsets = [1, 0], sizes = [128, 8], strides = [1, 1]} : vector<131x8xf32> to vector<128x8xf32>
    %10 = vector.extract_strided_slice %7 {offsets = [2, 0], sizes = [128, 8], strides = [1, 1]} : vector<131x8xf32> to vector<128x8xf32>
    %11 = vector.extract_strided_slice %7 {offsets = [3, 0], sizes = [128, 8], strides = [1, 1]} : vector<131x8xf32> to vector<128x8xf32>
    %12 = tpu.concatenate %8, %9, %10, %11 in 1 : vector<128x8xf32>, vector<128x8xf32>, vector<128x8xf32>, vector<128x8xf32> -> vector<128x32xf32>
    %13 = arith.truncf %12 : vector<128x32xf32> to vector<128x32xbf16>
    %c0_7 = arith.constant 0 : index
    %c0_8 = arith.constant 0 : index
    %14 = vector.load %arg4[%c0_7, %c0_8] : memref<32x256xbf16, #tpu.memory_space<vmem>>, vector<32x256xbf16>
    %cst = arith.constant dense<0.000000e+00> : vector<128x256xf32>
    %15 = tpu.matmul %13, %14, %cst {dimension_numbers = #tpu.dot_dimension_numbers<[1], [0], [0], [1], [0, 0, 1, 1], [], []>} : vector<128x32xbf16>, vector<32x256xbf16>, vector<128x256xf32> -> vector<128x256xf32>
    %16 = vector.extract_strided_slice %15 {offsets = [0, 0], sizes = [128, 128], strides = [1, 1]} : vector<128x256xf32> to vector<128x128xf32>
    %17 = vector.extract_strided_slice %15 {offsets = [0, 128], sizes = [128, 128], strides = [1, 1]} : vector<128x256xf32> to vector<128x128xf32>
    %18 = arith.mulf %16, %16 : vector<128x128xf32>
    %19 = arith.mulf %17, %17 : vector<128x128xf32>
    %20 = arith.addf %18, %19 : vector<128x128xf32>
    %21 = math.sqrt %20 : vector<128x128xf32>
    %22 = arith.truncf %21 : vector<128x128xf32> to vector<128x128xbf16>
    %c0_9 = arith.constant 0 : index
    %c0_10 = arith.constant 0 : index
    %23 = vector.load %arg5[%c0_9, %c0_10] : memref<128x128xbf16, #tpu.memory_space<vmem>>, vector<128x128xbf16>
    %cst_11 = arith.constant dense<0.000000e+00> : vector<128x128xf32>
    %24 = tpu.matmul %22, %23, %cst_11 {dimension_numbers = #tpu.dot_dimension_numbers<[1], [0], [0], [1], [0, 0, 1, 1], [], []>} : vector<128x128xbf16>, vector<128x128xbf16>, vector<128x128xf32> -> vector<128x128xf32>
    %25 = tpu.iota {dimensions = array<i32: 0>} : vector<128x128xi32>
    %c128_i32 = arith.constant 128 : i32
    %26 = arith.muli %arg1, %c128_i32 : i32
    %c128_i32_12 = arith.constant 128 : i32
    %27 = arith.subi %c128_i32_12, %26 : i32
    %28 = vector.broadcast %27 : i32 to vector<128x128xi32>
    %29 = arith.cmpi slt, %25, %28 : vector<128x128xi32>
    %cst_13 = arith.constant 0.000000e+00 : f32
    %30 = vector.broadcast %cst_13 : f32 to vector<128x128xf32>
    %31 = arith.select %29, %24, %30 : vector<128x128xi1>, vector<128x128xf32>
    %c0_14 = arith.constant 0 : index
    %c0_15 = arith.constant 0 : index
    %c0_16 = arith.constant 0 : index
    %32 = vector.load %arg7[%c0_14, %c0_15, %c0_16] : memref<1x128x128xf32, #tpu.memory_space<vmem>>, vector<1x128x128xf32>
    %33 = vector.shape_cast %32 : vector<1x128x128xf32> to vector<128x128xf32>
    %34 = vector.shape_cast %31 : vector<128x128xf32> to vector<1x128x128xf32>
    tpu.vector_store %arg7[%c0_14, %c0_15, %c0_16], %34 {strides = array<i32>} : memref<1x128x128xf32, #tpu.memory_space<vmem>>, vector<1x128x128xf32>,
    %35 = arith.truncf %31 : vector<128x128xf32> to vector<128x128xbf16>
    %c0_17 = arith.constant 0 : index
    %c0_18 = arith.constant 0 : index
    %36 = vector.load %arg6[%c0_17, %c0_18] : memref<128x32xbf16, #tpu.memory_space<vmem>>, vector<128x32xbf16>
    %cst_19 = arith.constant dense<0.000000e+00> : vector<128x32xf32>
    %37 = tpu.matmul %35, %36, %cst_19 {dimension_numbers = #tpu.dot_dimension_numbers<[1], [0], [0], [1], [0, 0, 1, 1], [], []>} : vector<128x128xbf16>, vector<128x32xbf16>, vector<128x32xf32> -> vector<128x32xf32>
    %38 = vector.extract_strided_slice %37 {offsets = [0, 0], sizes = [128, 8], strides = [1, 1]} : vector<128x32xf32> to vector<128x8xf32>
    %cst_20 = arith.constant 0.000000e+00 : f32
    %39 = vector.broadcast %cst_20 : f32 to vector<3x8xf32>
    %40 = tpu.concatenate %38, %39 in 0 : vector<128x8xf32>, vector<3x8xf32> -> vector<131x8xf32>
    %41 = vector.extract_strided_slice %37 {offsets = [0, 8], sizes = [128, 8], strides = [1, 1]} : vector<128x32xf32> to vector<128x8xf32>
    %cst_21 = arith.constant 0.000000e+00 : f32
    %42 = vector.broadcast %cst_21 : f32 to vector<1x8xf32>
    %cst_22 = arith.constant 0.000000e+00 : f32
    %43 = vector.broadcast %cst_22 : f32 to vector<2x8xf32>
    %44 = tpu.concatenate %42, %41, %43 in 0 : vector<1x8xf32>, vector<128x8xf32>, vector<2x8xf32> -> vector<131x8xf32>
    %45 = arith.addf %40, %44 : vector<131x8xf32>
    %46 = vector.extract_strided_slice %37 {offsets = [0, 16], sizes = [128, 8], strides = [1, 1]} : vector<128x32xf32> to vector<128x8xf32>
    %cst_23 = arith.constant 0.000000e+00 : f32
    %47 = vector.broadcast %cst_23 : f32 to vector<2x8xf32>
    %cst_24 = arith.constant 0.000000e+00 : f32
    %48 = vector.broadcast %cst_24 : f32 to vector<1x8xf32>
    %49 = tpu.concatenate %47, %46, %48 in 0 : vector<2x8xf32>, vector<128x8xf32>, vector<1x8xf32> -> vector<131x8xf32>
    %50 = arith.addf %45, %49 : vector<131x8xf32>
    %51 = vector.extract_strided_slice %37 {offsets = [0, 24], sizes = [128, 8], strides = [1, 1]} : vector<128x32xf32> to vector<128x8xf32>
    %cst_25 = arith.constant 0.000000e+00 : f32
    %52 = vector.broadcast %cst_25 : f32 to vector<3x8xf32>
    %53 = tpu.concatenate %52, %51 in 0 : vector<3x8xf32>, vector<128x8xf32> -> vector<131x8xf32>
    %54 = arith.addf %50, %53 : vector<131x8xf32>
    %55 = vector.extract_strided_slice %54 {offsets = [0, 0], sizes = [128, 8], strides = [1, 1]} : vector<131x8xf32> to vector<128x8xf32>
    %c0_26 = arith.constant 0 : index
    %c0_27 = arith.constant 0 : index
    %56 = vector.load %arg9[%c0_26, %c0_27] : memref<3x8xf32, #tpu.memory_space<vmem>>, vector<3x8xf32>
    %cst_28 = arith.constant 0.000000e+00 : f32
    %57 = vector.broadcast %cst_28 : f32 to vector<125x8xf32>
    %58 = tpu.concatenate %56, %57 in 0 : vector<3x8xf32>, vector<125x8xf32> -> vector<128x8xf32>
    %59 = arith.addf %55, %58 : vector<128x8xf32>
    %c0_29 = arith.constant 0 : index
    %c0_30 = arith.constant 0 : index
    %c0_31 = arith.constant 0 : index
    %60 = vector.load %arg8[%c0_29, %c0_30, %c0_31] : memref<1x128x8xf32, #tpu.memory_space<vmem>>, vector<1x128x8xf32>
    %61 = vector.shape_cast %60 : vector<1x128x8xf32> to vector<128x8xf32>
    %62 = vector.shape_cast %59 : vector<128x8xf32> to vector<1x128x8xf32>
    tpu.vector_store %arg8[%c0_29, %c0_30, %c0_31], %62 {strides = array<i32>} : memref<1x128x8xf32, #tpu.memory_space<vmem>>, vector<1x128x8xf32>,
    %63 = vector.extract_strided_slice %54 {offsets = [128, 0], sizes = [3, 8], strides = [1, 1]} : vector<131x8xf32> to vector<3x8xf32>
    %c0_32 = arith.constant 0 : index
    %c0_33 = arith.constant 0 : index
    %64 = vector.load %arg9[%c0_32, %c0_33] : memref<3x8xf32, #tpu.memory_space<vmem>>, vector<3x8xf32>
    tpu.vector_store %arg9[%c0_32, %c0_33], %63 {strides = array<i32>} : memref<3x8xf32, #tpu.memory_space<vmem>>, vector<3x8xf32>,
    return
  }
  func.func @transform_0(%arg0: i32, %arg1: i32) -> (i32, i32, i32) {
    %c0_i32 = arith.constant 0 : i32
    %c0_i32_0 = arith.constant 0 : i32
    return %arg0, %arg1, %c0_i32 : i32, i32, i32
  }
  func.func @transform_1(%arg0: i32, %arg1: i32) -> (i32, i32, i32, i32) {
    %c0_i32 = arith.constant 0 : i32
    %c0_i32_0 = arith.constant 0 : i32
    %c0_i32_1 = arith.constant 0 : i32
    return %arg0, %arg1, %c0_i32, %c0_i32_0 : i32, i32, i32, i32
  }
  func.func @transform_2(%arg0: i32, %arg1: i32) -> (i32, i32) {
    %c0_i32 = arith.constant 0 : i32
    %c0_i32_0 = arith.constant 0 : i32
    %c0_i32_1 = arith.constant 0 : i32
    return %c0_i32, %c0_i32_0 : i32, i32
  }
  func.func @transform_3(%arg0: i32, %arg1: i32) -> (i32, i32) {
    %c0_i32 = arith.constant 0 : i32
    %c0_i32_0 = arith.constant 0 : i32
    %c0_i32_1 = arith.constant 0 : i32
    return %c0_i32, %c0_i32_0 : i32, i32
  }
  func.func @transform_4(%arg0: i32, %arg1: i32) -> (i32, i32) {
    %c0_i32 = arith.constant 0 : i32
    %c0_i32_0 = arith.constant 0 : i32
    %c0_i32_1 = arith.constant 0 : i32
    return %c0_i32, %c0_i32_0 : i32, i32
  }
  func.func @transform_5(%arg0: i32, %arg1: i32) -> (i32, i32, i32) {
    %c0_i32 = arith.constant 0 : i32
    %c0_i32_0 = arith.constant 0 : i32
    return %arg0, %arg1, %c0_i32 : i32, i32, i32
  }
  func.func @transform_6(%arg0: i32, %arg1: i32) -> (i32, i32, i32) {
    %c0_i32 = arith.constant 0 : i32
    %c0_i32_0 = arith.constant 0 : i32
    return %arg0, %arg1, %c0_i32 : i32, i32, i32
  }
}

</mosaic_0001>

<bundles_post_ra>
// kernel: tpu_custom_call.1
= control target key start
LH: loop header
LB: loop body
LE: loop exit
PB: predicated region body
PF: predicated region fallthrough
CT: control target
= control target key end

     0   :  { %12 = vsyncpa [#allocation4], 0  ;;  %s3404_s0 = inlined_call_operand.vmem [shape: f32[4,256,8], index: 0, kind: input, shape index: {}]   ;;  %s3405_s1 = inlined_call_operand.vmem [shape: f32[4,2,3,8], index: 1, kind: input, shape index: {}]   ;;  %s3406_s2 = inlined_call_operand.vmem [shape: bf16[32,256], index: 2, kind: input, shape index: {}]   ;;  %s3407_s3 = inlined_call_operand.vmem [shape: bf16[128,128], index: 3, kind: input, shape index: {}]   ;;  %s3408_s4 = inlined_call_operand.vmem [shape: bf16[128,32], index: 4, kind: input, shape index: {}]   ;;  %s3409_s5 = inlined_call_operand.hbm [shape: f32[4,256,128], index: 5, kind: output, shape index: {0}]   ;;  %s3410_s6 = inlined_call_operand.vmem [shape: f32[4,256,8], index: 6, kind: output, shape index: {1}]  }
   0x1   :  { %14 = vsyncpa [#allocation4 + $0x1], 0  ;;  %s2514_s21 = smov 0   ;;  %s2516_s22 = smov 0  }
   0x2   :  { %s2518_s23 = smov 0   ;;  %s2520_s24 = smov 0  }
   0x3   :  { %s2522_s25 = smov 0   ;;  %s2524_s26 = smov 0  }
   0x4   :  { %s2526_s27 = smov 0   ;;  %s2528_s28 = smov 0  }
   0x5 LB: > { %3421 = sst [smem:[#allocation6_spill]] %s2439_s21  ;;  %s1933_s29 = sadd.s32 4294967295, %s2467_s28   ;;  %s2467_s28 = sphi %s2528_s28, %s20_s28   ;;  %s2463_s27 = sphi %s2526_s27, %s3445_s27   ;;  %s2459_s26 = sphi %s2524_s26, %s3444_s26   ;;  %s2455_s25 = sphi %s2522_s25, %s3439_s25   ;;  %s2451_s24 = sphi %s2520_s24, %s3438_s24   ;;  %s2447_s23 = sphi %s2518_s23, %s3437_s23   ;;  %s2443_s22 = sphi %s2516_s22, %s3443_s22   ;;  %s2439_s21 = sphi %s2514_s21, %s3442_s21  }
   0x6   : > { %3422 = sst [smem:[#allocation7_spill]] %s2447_s23  ;;  %s1934_s30 = sadd.s32 4294967294, %s2467_s28  }
   0x7   : > { %3423 = sst [smem:[#allocation8_spill]] %s2459_s26  ;;  %s29_s7 = sadd.s32 1, %s2459_s26 }
   0x8   : > { %3424 = sst [smem:[#allocation9_spill]] %s2463_s27  ;;  %p30_p0 = scmp.ge.s32.totalorder %s29_s7, 2 }
   0x9   : > { %3425 = sst [smem:[#allocation10_spill]] %s2467_s28  ;;  %s32_s8 = sadd.s32 1, %s2463_s27 }
   0xa   : > { %p170_p1 = scmp.ne.s32.totalorder %s2447_s23, %s2443_s22  ;;  %p171_p2 = scmp.eq.s32.totalorder %s1933_s29, 7 }
   0xb   : > { %s3447_s7 = smov (%p30_p0, %s29_s7), 0  ;;  %s3449_s8 = smov (!%p30_p0, %s32_s8), %s2463_s27 }
   0xc   : > { %3426 = sst [smem:[#allocation11_spill]] %s3447_s7  ;;  %s156_s9 = ssub.s32 %s2459_s26, %s3447_s7 }
   0xd   : > { %p2565_p3 = por %p171_p2, %p170_p1  ;;  %p34_p4 = scmp.ge.s32.totalorder %s3449_s8, 4 }
   0xe   : > { %p176_p5 = scmp.ne.s32.totalorder %s2443_s22, %s2439_s21  ;;  %p177_p6 = scmp.eq.s32.totalorder %s1934_s30, 7 }
   0xf   : > { %p1937_p7 = scmp.ge.s32.totalorder %s2467_s28, 1  ;;  %s3451_s8 = smov (%p34_p4, %s3449_s8), 0 }
  0x10   : > { %3428 = sst [smem:[#allocation12_spill]] %s3451_s8  ;;  %p2574_p8 = por %p177_p6, %p176_p5 }
  0x11   : > { %p256_p9 = scmp.lt.s32.totalorder %s2467_s28, 9  ;;  %s155_s12 = ssub.s32 %s2463_s27, %s3451_s8 }
  0x12   : > { %s3429_s11 = scalar_select %p2574_p8, 1, 0 }
  0x13   : > { %s160_s13 = sadd.s32 1, %s2447_s23  ;;  %s157_s14 = sor.u32 %s156_s9, %s155_s12 }
  0x14   : > { %3430 = sst [smem:[#allocation13_spill]] %s3429_s11  ;;  %p257_p10 = pnand %p1937_p7, %p256_p9 }
  0x15   : > { %p158_p11 = scmp.eq.s32.totalorder %s157_s14, 0  ;;  %s3415_s16 = sand.u32 (!%p257_p10), 1, %s2443_s22  }
  0x16   : > { %260 = sbr.rel (%p257_p10) target bundleno = 1075 (0x433), region = 40  ;;  %s2587_s17 = sshll.u32 (!%p257_p10), %s2451_s24, 4 }
  0x17   : > { %s2583_s15 = scalar_select %p158_p11, %s2447_s23, %s160_s13  }
  0x18   : > { %s1938_s18 = sshll.u32 (!%p257_p10), %s3415_s16, 7  ;;  %p308_p12 = scmp.lt.s32.totalorder (!%p257_p10), %s2455_s25, 3 }
  0x19   : > { %3431 = sst [smem:[#allocation14_spill]] %s2583_s15  ;;  %p310_p13 = scmp.lt.s32.totalorder (!%p257_p10), %s2587_s17, 31 }
  0x1a   : > { %p319_p0 = scmp.lt.s32.totalorder (!%p257_p10), %s2451_s24, 1  ;;  %p1947_p1 = scmp.ne.s32.totalorder (!%p257_p10), %s2451_s24, 0 }
  0x1d   : > { %s309_s19 = scalar_select %p308_p12, %s2455_s25, 3 }
  0x1e   : > { %s311_s20 = scalar_select %p310_p13, %s2587_s17, 31 }
  0x1f   : > { %s1940_s29 = sshll.u32 %s309_s19, 5  ;;  %s1942_s12 = sshll.u32 %s309_s19, 1  ;;  %vm341_vm0 = vcmask (!%p1947_p1), 59392   ;;  %v2469_v0 = vmov (!%p1947_p1), 0.0  }
  0x20   : > { %s313_s30 = sadd.s32 %s1940_s29, %s311_s20  ;;  %s2612_s20 = scalar_lea.vmem [#allocation3], %s1938_s18  ;;  %342 = vst.msk [vmem:[#allocation2] sm:$0x7] (!%p1947_p1), %vm341_vm0, %v2469_v0 }
  0x21   : > { %s1941_s9 = sshll.u32 %s313_s30, 3  ;;  %340 = sbr.rel (%p1947_p1) target bundleno = 40 (0x28), region = 44 }
  0x22   : > { %s2599_s8 = scalar_lea.vmem %s3404_s0, %s1941_s9  ;;  %s2604_s26 = scalar_lea.vmem %s3410_s6, %s1941_s9 }
  0x23   : > { %s320_s16 = scalar_select %p319_p0, %s2451_s24, 1 }
  0x25   : > { %s322_s15 = sadd.s32 %s1942_s12, %s320_s16 }
  0x26   : > { %s1943_s23 = sshll.u32 %s322_s15, 2 }
  0x27   : > { %s2610_s28 = scalar_lea.vmem %s3405_s1, %s1943_s23 }
  0x28 PF: > { %v2616_v1 = vld [vmem:[%s2599_s8] sm:$0xff]  ;;  %v2619_v2 = vld [vmem:[%s2599_s8 + $0x8] sm:$0xff]  ;;  %v2622_v3 = vld [vmem:[%s2599_s8 + $0x10] sm:$0xff]  ;;  %vm377_vm1 = vcmask 1046528   ;;  %vm541_vm2 = vcmask 1044480   ;;  %vm459_vm3 = vcmask 1045504  }
  0x29   : > { %v378_v4 = vrot.slane %v2616_v1, 1  ;;  %v379_v5 = vrot.slane %v2619_v2, 1  ;;  %v381_v6 = vrot.slane %v2622_v3, 1  ;;  %v542_v7 = vrot.slane %v2616_v1, 3  ;;  %v2632_v11 = vld [vmem:[%s2599_s8 + $0x18] sm:$0xff]  ;;  %v2635_v12 = vld [vmem:[%s2599_s8 + $0x20] sm:$0xff] }
  0x2a   : > { %v543_v8 = vrot.slane %v2619_v2, 3  ;;  %v545_v9 = vrot.slane %v2622_v3, 3  ;;  %v460_v10 = vrot.slane %v2616_v1, 2  ;;  %v461_v15 = vrot.slane %v2619_v2, 2  ;;  %v2645_v21 = vld [vmem:[%s2599_s8 + $0x28] sm:$0xff]  ;;  %v2651_v26 = vld [vmem:[%s2599_s8 + $0x30] sm:$0xff] }
  0x2b   : > { %v380_v13 = vsel %vm377_vm1, %v378_v4, %v379_v5  ;;  %v382_v14 = vsel %vm377_vm1, %v379_v5, %v381_v6  ;;  %v463_v16 = vrot.slane %v2622_v3, 2  ;;  %v383_v20 = vrot.slane %v2632_v11, 1  ;;  %s2470_s21 = smov 8   ;;  %v2658_v31 = vld [vmem:[%s2599_s8 + $0x38] sm:$0xff]  ;;  %s2471_s23 = smov 24   ;;  %v2666_v36 = vld [vmem:[%s2599_s8 + $0x40] sm:$0xff] }
  0x2c   : > { %v2199_v17 = vpack.i.bf16 %v382_v14, %v380_v13  ;;  %v544_v18 = vsel %vm541_vm2, %v542_v7, %v543_v8  ;;  %v546_v19 = vsel %vm541_vm2, %v543_v8, %v545_v9  ;;  %v462_v23 = vsel %vm459_vm3, %v460_v10, %v461_v15  ;;  %v2319_v41 = vld [vmem:[%s3406_s2 + $0x4] ss:$8 sps:$4 sm:$0xff]   ;;  %v2321_v42 = vld [vmem:[%s3406_s2] ss:$8 sps:$4 sm:$0xff]   ;;  %v2322_v46 = vld [vmem:[%s3406_s2 + $0x14] ss:$8 sps:$4 sm:$0xff]  }
  0x2d   : > { %v2209_v22 = vpack.i.bf16 %v546_v19, %v544_v18  ;;  %v464_v24 = vsel %vm459_vm3, %v461_v15, %v463_v16  ;;  %v385_v25 = vrot.slane %v2635_v12, 1  ;;  %v384_v28 = vsel %vm377_vm1, %v381_v6, %v383_v20  ;;  %v2324_v47 = vld [vmem:[%s3406_s2 + $0x10] ss:$8 sps:$4 sm:$0xff]   ;;  %s2472_s30 = smov 16   ;;  %731 = vmatprep.subr.bf16.mxu0 %v2319_v41  ;;  %v2695_v56 = vld [vmem:[%s2599_s8 + $0x48] sm:$0xff]  ;;  %v2719_v15 = vld [vmem:[%s2599_s8 + $0x60] sm:$0xff] }
  0x2e   : > { %2200 = vrot.lane.b32.xlu0 %v2199_v17, %s2470_s21  ;;  %v2204_v27 = vpack.i.bf16 %v464_v24, %v462_v23  ;;  %v465_v29 = vrot.slane %v2632_v11, 2  ;;  %v467_v30 = vrot.slane %v2635_v12, 2  ;;  %v547_v33 = vrot.slane %v2632_v11, 3  ;;  %732 = vmatpush1.bf16.msra.mxu0 %v2321_v42  ;;  %v2701_v60 = vld [vmem:[%s2599_s8 + $0x50] sm:$0xff]  ;;  %v2716_v14 = vld [vmem:[%s2599_s8 + $0x58] sm:$0xff]  ;;  %s2475_s9 = smov 120  }
  0x2f   : > { %2210 = vrot.lane.b32.xlu1 %v2209_v22, %s2471_s23  ;;  %v386_v32 = vsel %vm377_vm1, %v383_v20, %v385_v25  ;;  %v549_v34 = vrot.slane %v2635_v12, 3  ;;  %v387_v35 = vrot.slane %v2645_v21, 1  ;;  %v389_v40 = vrot.slane %v2651_v26, 1  ;;  %733 = vmatprep.subr.bf16.mxu0 %v2322_v46  ;;  %s2476_s12 = smov 104   ;;  %s2003_s13 = sshll.u32 %s2455_s25, 5 }
  0x30   : > { %v2214_v37 = vpack.i.bf16 %v386_v32, %v384_v28  ;;  %v466_v38 = vsel %vm459_vm3, %v463_v16, %v465_v29  ;;  %v468_v39 = vsel %vm459_vm3, %v465_v29, %v467_v30  ;;  %v548_v44 = vsel %vm541_vm2, %v545_v9, %v547_v33  ;;  %s1789_s14 = sadd.s32 %s2003_s13, %s2587_s17  ;;  %s1792_s15 = sshll.u32 %s2612_s20, 4  ;;  %s3286_s15 = int_to_ptr.vmem [resolvable:$true] %s1792_s15 }
  0x31   : > { %v2219_v43 = vpack.i.bf16 %v468_v39, %v466_v38  ;;  %v550_v45 = vsel %vm541_vm2, %v547_v33, %v549_v34  ;;  %v388_v49 = vsel %vm377_vm1, %v385_v25, %v387_v35  ;;  %v469_v50 = vrot.slane %v2645_v21, 2  ;;  %s3432_s25 = sand.u32 1, %s2443_s22   ;;  %s2373_s17 = scalar_lea.vmem %s3286_s15, 2048 }
  0x32   : > { %2205 = vrot.lane.b32.xlu0 %v2204_v27, %s2472_s30  ;;  %v2224_v48 = vpack.i.bf16 %v550_v45, %v548_v44  ;;  %v471_v51 = vrot.slane %v2651_v26, 2  ;;  %v390_v52 = vsel %vm377_vm1, %v387_v35, %v389_v40  ;;  %v551_v53 = vrot.slane %v2645_v21, 3  ;;  %734 = vmatpush1.bf16.msra.mxu0 %v2324_v47  ;;  %s3292_s16 = scalar_lea.sflag [#allocation4], %s3432_s25  ;;  %p2374_p2 = scmp.ne.s32.totalorder %s3286_s15, %s2373_s17 }
  0x33   : > { %2215 = vrot.lane.b32.xlu1 %v2214_v37, %s2470_s21  ;;  %v553_v54 = vrot.slane %v2651_v26, 3  ;;  %v391_v55 = vrot.slane %v2658_v31, 1  ;;  %v470_v57 = vsel %vm459_vm3, %v467_v30, %v469_v50  ;;  %v393_v59 = vrot.slane %v2666_v36, 1  ;;  %s2477_s18 = smov [#allocation3]  }
  0x34   : > { %v472_v58 = vsel %vm459_vm3, %v469_v50, %v471_v51  ;;  %v2229_v61 = vpack.i.bf16 %v390_v52, %v388_v49  ;;  %v552_v63 = vsel %vm541_vm2, %v549_v34, %v551_v53  ;;  %v473_v0 = vrot.slane %v2658_v31, 2  ;;  %v2753_v49 = vld [vmem:[%s2599_s8 + $0x70] sm:$0xff]  ;;  %p2375_p4 = pnand %p2374_p2, %p2565_p3  ;;  %s2377_s19 = sshll.u32 %s2477_s18, 4  ;;  %s2378_s19 = int_to_ptr.vmem [resolvable:$false] %s2377_s19 }
  0x35   : > { %v2234_v62 = vpack.i.bf16 %v472_v58, %v470_v57  ;;  %v554_v4 = vsel %vm541_vm2, %v551_v53, %v553_v54  ;;  %v392_v5 = vsel %vm377_vm1, %v389_v40, %v391_v55  ;;  %v394_v6 = vsel %vm377_vm1, %v391_v55, %v393_v59  ;;  %p2380_p6 = scmp.lt.s32.totalorder %s3286_s15, %s2378_s19 }
  0x36   : > { %2220 = vrot.lane.b32.xlu0 %v2219_v43, %s2472_s30  ;;  %v475_v7 = vrot.slane %v2666_v36, 2  ;;  %v555_v8 = vrot.slane %v2658_v31, 3  ;;  %v557_v9 = vrot.slane %v2666_v36, 3  ;;  %v395_v10 = vrot.slane %v2695_v56, 1  ;;  %p2376_p5 = pneg %p2375_p4 }
  0x37   : > { %2225 = vrot.lane.b32.xlu1 %v2224_v48, %s2471_s23  ;;  %v397_v13 = vrot.slane %v2701_v60, 1  ;;  %v2239_v16 = vpack.i.bf16 %v554_v4, %v552_v63  ;;  %v474_v17 = vsel %vm459_vm3, %v471_v51, %v473_v0  ;;  %v2244_v18 = vpack.i.bf16 %v394_v6, %v392_v5  ;;  %v2750_v48 = vld [vmem:[%s2599_s8 + $0x68] sm:$0xff]  ;;  %v2767_v63 = vld [vmem:[%s2599_s8 + $0x78] sm:$0xff] }
  0x38   : > { %v476_v19 = vsel %vm459_vm3, %v473_v0, %v475_v7  ;;  %v477_v20 = vrot.slane %v2695_v56, 2  ;;  %v479_v22 = vrot.slane %v2701_v60, 2  ;;  %v556_v23 = vsel %vm541_vm2, %v553_v54, %v555_v8  ;;  %v359_v0 = vld [vmem:[%s2610_s28] sm:$0x7]  ;;  %s1968_s28 = sshll.u32 %s2451_s24, 7  ;;  %s2474_s24 = smov 112  }
  0x39   : > { %v558_v24 = vsel %vm541_vm2, %v555_v8, %v557_v9  ;;  %v559_v25 = vrot.slane %v2695_v56, 3  ;;  %v561_v27 = vrot.slane %v2701_v60, 3  ;;  %v399_v28 = vrot.slane %v2716_v14, 1  ;;  %s1191_s8 = ssub.s32 128, %s1968_s28 }
  0x3a   : > { %2230 = vrot.lane.b32.xlu0 %v2229_v61, %s2470_s21  ;;  %v401_v29 = vrot.slane %v2719_v15, 1  ;;  %v2249_v30 = vpack.i.bf16 %v476_v19, %v474_v17  ;;  %v396_v32 = vsel %vm377_vm1, %v393_v59, %v395_v10  ;;  %v2254_v33 = vpack.i.bf16 %v558_v24, %v556_v23 }
  0x3b   : > { %2235 = vrot.lane.b32.xlu1 %v2234_v62, %s2472_s30  ;;  %v398_v34 = vsel %vm377_vm1, %v395_v10, %v397_v13  ;;  %v478_v35 = vsel %vm459_vm3, %v475_v7, %v477_v20  ;;  %v480_v37 = vsel %vm459_vm3, %v477_v20, %v479_v22  ;;  %v481_v40 = vrot.slane %v2716_v14, 2 }
  0x3c   : > { %v2259_v38 = vpack.i.bf16 %v398_v34, %v396_v32  ;;  %v2264_v39 = vpack.i.bf16 %v480_v37, %v478_v35  ;;  %v483_v41 = vrot.slane %v2719_v15, 2  ;;  %v560_v42 = vsel %vm541_vm2, %v557_v9, %v559_v25 }
  0x3d   : > { %v562_v43 = vsel %vm541_vm2, %v559_v25, %v561_v27  ;;  %v400_v44 = vsel %vm377_vm1, %v397_v13, %v399_v28  ;;  %v402_v45 = vsel %vm377_vm1, %v399_v28, %v401_v29  ;;  %v563_v46 = vrot.slane %v2716_v14, 3 }
  0x3e   : > { %2240 = vrot.lane.b32.xlu0 %v2239_v16, %s2471_s23  ;;  %v565_v47 = vrot.slane %v2719_v15, 3  ;;  %v2269_v50 = vpack.i.bf16 %v562_v43, %v560_v42  ;;  %v2274_v51 = vpack.i.bf16 %v402_v45, %v400_v44  ;;  %v482_v52 = vsel %vm459_vm3, %v479_v22, %v481_v40 }
  0x3f   : > { %2245 = vrot.lane.b32.xlu1 %v2244_v18, %s2470_s21  ;;  %v484_v53 = vsel %vm459_vm3, %v481_v40, %v483_v41  ;;  %v403_v54 = vrot.slane %v2750_v48, 1  ;;  %v405_v55 = vrot.slane %v2753_v49, 1  ;;  %v564_v57 = vsel %vm541_vm2, %v561_v27, %v563_v46 }
  0x40   : > { %v566_v58 = vsel %vm541_vm2, %v563_v46, %v565_v47  ;;  %v485_v59 = vrot.slane %v2750_v48, 2  ;;  %v487_v61 = vrot.slane %v2753_v49, 2  ;;  %v2473_v62 = vmov 0  }
  0x41   : > { %763 = vmatprep.mubr.bf16.mxu0 %v2473_v62  ;;  %v2279_v4 = vpack.i.bf16 %v484_v53, %v482_v52  ;;  %v567_v5 = vrot.slane %v2750_v48, 3  ;;  %v2284_v6 = vpack.i.bf16 %v566_v58, %v564_v57  ;;  %v404_v7 = vsel %vm377_vm1, %v401_v29, %v403_v54 }
  0x42   : > { %2250 = vrot.lane.b32.xlu0 %v2249_v30, %s2472_s30  ;;  %v406_v8 = vsel %vm377_vm1, %v403_v54, %v405_v55  ;;  %v569_v9 = vrot.slane %v2753_v49, 3  ;;  %v486_v10 = vsel %vm459_vm3, %v483_v41, %v485_v59  ;;  %v488_v13 = vsel %vm459_vm3, %v485_v59, %v487_v61 }
  0x43   : > { %2255 = vrot.lane.b32.xlu1 %v2254_v33, %s2471_s23  ;;  %v407_v16 = vrot.slane %v2767_v63, 1  ;;  %v409_v17 = vrot.slane %v359_v0, 1  ;;  %v2289_v18 = vpack.i.bf16 %v406_v8, %v404_v7  ;;  %v568_v19 = vsel %vm541_vm2, %v565_v47, %v567_v5 }
  0x44   : > { %v2294_v20 = vpack.i.bf16 %v488_v13, %v486_v10  ;;  %v570_v22 = vsel %vm541_vm2, %v567_v5, %v569_v9  ;;  %v489_v23 = vrot.slane %v2767_v63, 2  ;;  %v491_v24 = vrot.slane %v359_v0, 2 }
  0x45   : > { %v408_v25 = vsel %vm377_vm1, %v405_v55, %v407_v16  ;;  %v410_v27 = vsel %vm377_vm1, %v407_v16, %v409_v17  ;;  %v571_v28 = vrot.slane %v2767_v63, 3  ;;  %v573_v29 = vrot.slane %v359_v0, 3 }
  0x46   : > { %2260 = vrot.lane.b32.xlu0 %v2259_v38, %s2470_s21  ;;  %v2299_v30 = vpack.i.bf16 %v570_v22, %v568_v19  ;;  %v2304_v32 = vpack.i.bf16 %v410_v27, %v408_v25  ;;  %v490_v33 = vsel %vm459_vm3, %v487_v61, %v489_v23  ;;  %v492_v34 = vsel %vm459_vm3, %v489_v23, %v491_v24 }
  0x47   : > { %2265 = vrot.lane.b32.xlu1 %v2264_v39, %s2472_s30  ;;  %v572_v35 = vsel %vm541_vm2, %v569_v9, %v571_v28  ;;  %v574_v37 = vsel %vm541_vm2, %v571_v28, %v573_v29  ;;  %v2309_v38 = vpack.i.bf16 %v492_v34, %v490_v33  ;;  %vm623_vm4 = vcmask 64512  }
  0x48   : > { %v2314_v39 = vpack.i.bf16 %v574_v37, %v572_v35  ;;  %vm640_vm5 = vcmask 130048   ;;  %vm657_vm6 = vcmask 195584   ;;  %vm706_vm7 = vcmask 261120  }
  0x4a   : > { %2270 = vrot.lane.b32.xlu0 %v2269_v50, %s2471_s23 }
  0x4b   : > { %2275 = vrot.lane.b32.xlu1 %v2274_v51, %s2470_s21 }
  0x4e   : > { %2280 = vrot.lane.b32.xlu0 %v2279_v4, %s2472_s30 }
  0x4f   : > { %2285 = vrot.lane.b32.xlu1 %v2284_v6, %s2471_s23 }
  0x52   : > { %2290 = vrot.lane.b32.xlu0 %v2289_v18, %s2470_s21 }
  0x53   : > { %2295 = vrot.lane.b32.xlu1 %v2294_v20, %s2472_s30 }
  0x56   : > { %2300 = vrot.lane.b32.xlu0 %v2299_v30, %s2471_s23 }
  0x57   : > { %2305 = vrot.lane.b32.xlu1 %v2304_v32, %s2470_s21 }
  0x5a   : > { %2310 = vrot.lane.b32.xlu0 %v2309_v38, %s2472_s30 }
  0x5b   : > { %2315 = vrot.lane.b32.xlu1 %v2314_v39, %s2471_s23  ;;  %s2004_s23 = sshll.u32 %s1789_s14, 7 }
  0x5c   : > { %s3283_s11 = scalar_lea.hbm %s3409_s5, %s2004_s23 }
  0xa0   : > { %v2201_v40 = vpop.permute.xlu0 %2200 }
  0xa1   : > { %v2211_v41 = vpop.permute.xlu1 %2210  ;;  %v2203_v42 = vunpack.i.h.bf16 %v2201_v40  ;;  %v2202_v43 = vunpack.i.l.bf16 %v2201_v40 }
  0xa2   : > { %v2213_v44 = vunpack.i.h.bf16 %v2211_v41  ;;  %v2212_v45 = vunpack.i.l.bf16 %v2211_v41 }
  0xa3   : > { %v625_v52 = vsel %vm623_vm4, %v2619_v2, %v2203_v42  ;;  %v624_v53 = vsel %vm623_vm4, %v2616_v1, %v2202_v43 }
  0xa4   : > { %v2206_v46 = vpop.permute.xlu0 %2205 }
  0xa5   : > { %v2208_v47 = vunpack.i.h.bf16 %v2206_v46  ;;  %v2207_v50 = vunpack.i.l.bf16 %v2206_v46  ;;  %v2216_v51 = vpop.permute.xlu1 %2215 }
  0xa6   : > { %v2218_v54 = vunpack.i.h.bf16 %v2216_v51  ;;  %v2217_v55 = vunpack.i.l.bf16 %v2216_v51 }
  0xa7   : > { %v641_v57 = vsel %vm640_vm5, %v624_v53, %v2207_v50  ;;  %v642_v58 = vsel %vm640_vm5, %v625_v52, %v2208_v47 }
  0xa8   : > { %v627_v59 = vsel %vm623_vm4, %v2632_v11, %v2218_v54  ;;  %v626_v61 = vsel %vm623_vm4, %v2622_v3, %v2217_v55  ;;  %v2221_v0 = vpop.permute.xlu0 %2220  ;;  %v658_v4 = vsel %vm657_vm6, %v641_v57, %v2212_v45  ;;  %v659_v2 = vsel %vm657_vm6, %v642_v58, %v2213_v44 }
  0xa9   : > { %v2223_v5 = vunpack.i.h.bf16 %v2221_v0  ;;  %v2222_v1 = vunpack.i.l.bf16 %v2221_v0  ;;  %v2226_v6 = vpop.permute.xlu1 %2225  ;;  %v674_v7 = vpack.c.bf16 %v659_v2, %v658_v4 }
  0xaa   : > { %v2228_v8 = vunpack.i.h.bf16 %v2226_v6  ;;  %v2227_v9 = vunpack.i.l.bf16 %v2226_v6 }
  0xab   : > { %v644_v10 = vsel %vm640_vm5, %v627_v59, %v2223_v5  ;;  %v643_v13 = vsel %vm640_vm5, %v626_v61, %v2222_v1  ;;  %1952 = vmatmul.mubr.msk.bf16.vlgmr.msra.gmra.mrb[0].mxu0 %vm706_vm7, %v674_v7 }
  0xac   : > { %v2231_v11 = vpop.permute.xlu0 %2230  ;;  %773 = vmatprep.mubr.bf16.mxu0 %v2473_v62  ;;  %v660_v3 = vsel %vm657_vm6, %v643_v13, %v2227_v9  ;;  %v661_v16 = vsel %vm657_vm6, %v644_v10, %v2228_v8 }
  0xad   : > { %v2233_v17 = vunpack.i.h.bf16 %v2231_v11  ;;  %v2232_v18 = vunpack.i.l.bf16 %v2231_v11  ;;  %v2236_v19 = vpop.permute.xlu1 %2235  ;;  %v675_v25 = vpack.c.bf16 %v661_v16, %v660_v3 }
  0xae   : > { %v2238_v20 = vunpack.i.h.bf16 %v2236_v19  ;;  %v2237_v22 = vunpack.i.l.bf16 %v2236_v19 }
  0xaf   : > { %v629_v23 = vsel %vm623_vm4, %v2645_v21, %v2233_v17  ;;  %v628_v24 = vsel %vm623_vm4, %v2635_v12, %v2232_v18 }
  0xb0   : > { %v2241_v27 = vpop.permute.xlu0 %2240  ;;  %v645_v28 = vsel %vm640_vm5, %v628_v24, %v2237_v22  ;;  %v646_v29 = vsel %vm640_vm5, %v629_v23, %v2238_v20 }
  0xb1   : > { %v2243_v30 = vunpack.i.h.bf16 %v2241_v27  ;;  %v2242_v32 = vunpack.i.l.bf16 %v2241_v27  ;;  %v2246_v33 = vpop.permute.xlu1 %2245 }
  0xb2   : > { %v2248_v34 = vunpack.i.h.bf16 %v2246_v33  ;;  %v2247_v35 = vunpack.i.l.bf16 %v2246_v33 }
  0xb3   : > { %1953 = vmatmul.mubr.msk.bf16.gmra.mrb[4].mxu0 %vm706_vm7, %v675_v25  ;;  %v662_v37 = vsel %vm657_vm6, %v645_v28, %v2242_v32  ;;  %v663_v21 = vsel %vm657_vm6, %v646_v29, %v2243_v30 }
  0xb4   : > { %783 = vmatprep.mubr.bf16.mxu0 %v2473_v62  ;;  %v2251_v12 = vpop.permute.xlu0 %2250  ;;  %v631_v41 = vsel %vm623_vm4, %v2658_v31, %v2248_v34  ;;  %v630_v42 = vsel %vm623_vm4, %v2651_v26, %v2247_v35  ;;  %v676_v43 = vpack.c.bf16 %v663_v21, %v662_v37 }
  0xb5   : > { %v2253_v38 = vunpack.i.h.bf16 %v2251_v12  ;;  %v2252_v39 = vunpack.i.l.bf16 %v2251_v12  ;;  %v2256_v40 = vpop.permute.xlu1 %2255 }
  0xb6   : > { %v2258_v44 = vunpack.i.h.bf16 %v2256_v40  ;;  %v2257_v45 = vunpack.i.l.bf16 %v2256_v40 }
  0xb7   : > { %v648_v47 = vsel %vm640_vm5, %v631_v41, %v2253_v38  ;;  %v647_v50 = vsel %vm640_vm5, %v630_v42, %v2252_v39 }
  0xb8   : > { %v2261_v46 = vpop.permute.xlu0 %2260  ;;  %v664_v54 = vsel %vm657_vm6, %v647_v50, %v2257_v45  ;;  %v665_v31 = vsel %vm657_vm6, %v648_v47, %v2258_v44 }
  0xb9   : > { %v2266_v51 = vpop.permute.xlu1 %2265  ;;  %v2263_v52 = vunpack.i.h.bf16 %v2261_v46  ;;  %v2262_v53 = vunpack.i.l.bf16 %v2261_v46  ;;  %v677_v61 = vpack.c.bf16 %v665_v31, %v664_v54 }
  0xba   : > { %v2268_v26 = vunpack.i.h.bf16 %v2266_v51  ;;  %v2267_v55 = vunpack.i.l.bf16 %v2266_v51 }
  0xbb   : > { %1954 = vmatmul.mubr.msk.bf16.gmra.mrb[8].mxu0 %vm706_vm7, %v676_v43  ;;  %v633_v58 = vsel %vm623_vm4, %v2695_v56, %v2263_v52  ;;  %v632_v59 = vsel %vm623_vm4, %v2666_v36, %v2262_v53 }
  0xbc   : > { %793 = vmatprep.mubr.bf16.mxu0 %v2473_v62  ;;  %v2271_v57 = vpop.permute.xlu0 %2270  ;;  %v649_v5 = vsel %vm640_vm5, %v632_v59, %v2267_v55  ;;  %v650_v1 = vsel %vm640_vm5, %v633_v58, %v2268_v26  ;;  %v2327_v26 = vld [vmem:[%s3407_s3 + $0x10] sm:$0xff]   ;;  %v2329_v55 = vld [vmem:[%s3407_s3 + $0x20] sm:$0xff]   ;;  %v2332_v59 = vld [vmem:[%s3407_s3 + $0x38] sm:$0xff]  }
  0xbd   : > { %v2276_v0 = vpop.permute.xlu1 %2275  ;;  %v2273_v4 = vunpack.i.h.bf16 %v2271_v57  ;;  %v2272_v2 = vunpack.i.l.bf16 %v2271_v57  ;;  %v2330_v57 = vld [vmem:[%s3407_s3 + $0x28] sm:$0xff]   ;;  %v2331_v58 = vld [vmem:[%s3407_s3 + $0x30] sm:$0xff]  }
  0xbe   : > { %v2278_v7 = vunpack.i.h.bf16 %v2276_v0  ;;  %v2277_v8 = vunpack.i.l.bf16 %v2276_v0  ;;  %v2908_v0 = vld [vmem:[%s3408_s4 + $0x8] sm:$0xff]  }
  0xbf   : > { %v666_v9 = vsel %vm657_vm6, %v649_v5, %v2272_v2  ;;  %v667_v56 = vsel %vm657_vm6, %v650_v1, %v2273_v4  ;;  %v2917_v4 = vld [vmem:[%s3408_s4 + $0x10] sm:$0xff]   ;;  %v2924_v2 = vld [vmem:[%s3408_s4 + $0x18] sm:$0xff]   ;;  %v2931_v5 = vld [vmem:[%s3408_s4 + $0x20] sm:$0xff]  }
  0xc0   : > { %v2281_v6 = vpop.permute.xlu0 %2280  ;;  %v635_v11 = vsel %vm623_vm4, %v2716_v14, %v2278_v7  ;;  %v634_v3 = vsel %vm623_vm4, %v2701_v60, %v2277_v8  ;;  %v678_v16 = vpack.c.bf16 %v667_v56, %v666_v9  ;;  %v2938_v1 = vld [vmem:[%s3408_s4 + $0x28] sm:$0xff]   ;;  %v2952_v7 = vld [vmem:[%s3408_s4 + $0x38] sm:$0xff]  }
  0xc1   : > { %v2283_v36 = vunpack.i.h.bf16 %v2281_v6  ;;  %v2282_v10 = vunpack.i.l.bf16 %v2281_v6  ;;  %v2286_v13 = vpop.permute.xlu1 %2285  ;;  %v2945_v6 = vld [vmem:[%s3408_s4 + $0x30] sm:$0xff]  }
  0xc2   : > { %v2288_v18 = vunpack.i.h.bf16 %v2286_v13  ;;  %v2287_v19 = vunpack.i.l.bf16 %v2286_v13 }
  0xc3   : > { %1955 = vmatmul.mubr.msk.bf16.gmra.mrb[12].mxu0 %vm706_vm7, %v677_v61  ;;  %v652_v20 = vsel %vm640_vm5, %v635_v11, %v2283_v36  ;;  %v651_v22 = vsel %vm640_vm5, %v634_v3, %v2282_v10  ;;  %v2903_v61 = vld [vmem:[%s3408_s4] sm:$0xff]  }
  0xc4   : > { %803 = vmatprep.mubr.bf16.mxu0 %v2473_v62  ;;  %v2291_v17 = vpop.permute.xlu0 %2290  ;;  %v668_v27 = vsel %vm657_vm6, %v651_v22, %v2287_v19  ;;  %v669_v14 = vsel %vm657_vm6, %v652_v20, %v2288_v18  ;;  %2071 = vmatprep.subr.bf16.mxu0 %v2903_v61 }
  0xc5   : > { %v2296_v23 = vpop.permute.xlu1 %2295  ;;  %v2293_v24 = vunpack.i.h.bf16 %v2291_v17  ;;  %v2292_v25 = vunpack.i.l.bf16 %v2291_v17  ;;  %v679_v33 = vpack.c.bf16 %v669_v14, %v668_v27  ;;  %2072 = vmatpush3.bf16.msra.mxu0 %v2903_v61 }
  0xc6   : > { %v2298_v60 = vunpack.i.h.bf16 %v2296_v23  ;;  %v2297_v28 = vunpack.i.l.bf16 %v2296_v23  ;;  %2073 = vmatprep.subr.bf16.mxu0 %v2908_v0 }
  0xc7   : > { %v637_v30 = vsel %vm623_vm4, %v2750_v48, %v2293_v24  ;;  %v636_v32 = vsel %vm623_vm4, %v2719_v15, %v2292_v25 }
  0xc8   : > { %v2301_v29 = vpop.permute.xlu0 %2300  ;;  %v653_v21 = vsel %vm640_vm5, %v636_v32, %v2297_v28  ;;  %v654_v12 = vsel %vm640_vm5, %v637_v30, %v2298_v60 }
  0xc9   : > { %v2306_v34 = vpop.permute.xlu1 %2305  ;;  %v2303_v35 = vunpack.i.h.bf16 %v2301_v29  ;;  %v2302_v37 = vunpack.i.l.bf16 %v2301_v29  ;;  %2074 = vmatpush3.bf16.msra.mxu0 %v2908_v0 }
  0xca   : > { %v2308_v38 = vunpack.i.h.bf16 %v2306_v34  ;;  %v2307_v39 = vunpack.i.l.bf16 %v2306_v34  ;;  %2075 = vmatprep.subr.bf16.mxu0 %v2917_v4 }
  0xcb   : > { %1956 = vmatmul.mubr.msk.bf16.gmra.mrb[16].mxu0 %vm706_vm7, %v678_v16  ;;  %v670_v41 = vsel %vm657_vm6, %v653_v21, %v2302_v37  ;;  %v671_v48 = vsel %vm657_vm6, %v654_v12, %v2303_v35 }
  0xcc   : > { %813 = vmatprep.mubr.bf16.mxu0 %v2473_v62  ;;  %v2311_v40 = vpop.permute.xlu0 %2310  ;;  %v639_v44 = vsel %vm623_vm4, %v2767_v63, %v2308_v38  ;;  %v638_v45 = vsel %vm623_vm4, %v2753_v49, %v2307_v39  ;;  %v680_v46 = vpack.c.bf16 %v671_v48, %v670_v41  ;;  %v2325_v49 = vld [vmem:[%s3407_s3] sm:$0xff]   ;;  %v2326_v63 = vld [vmem:[%s3407_s3 + $0x8] sm:$0xff]  }
  0xcd   : > { %v2313_v15 = vunpack.i.h.bf16 %v2311_v40  ;;  %v2312_v42 = vunpack.i.l.bf16 %v2311_v40  ;;  %v2316_v43 = vpop.permute.xlu1 %2315  ;;  %2039 = vmatprep.subr.bf16.mxu1 %v2325_v49  ;;  %2076 = vmatpush3.bf16.msra.mxu0 %v2917_v4 }
  0xce   : > { %v2318_v47 = vunpack.i.h.bf16 %v2316_v43  ;;  %v2317_v50 = vunpack.i.l.bf16 %v2316_v43  ;;  %2040 = vmatpush3.bf16.msra.mxu1 %v2325_v49  ;;  %2077 = vmatprep.subr.bf16.mxu0 %v2924_v2 }
  0xcf   : > { %v656_v51 = vsel %vm640_vm5, %v639_v44, %v2313_v15  ;;  %v655_v52 = vsel %vm640_vm5, %v638_v45, %v2312_v42  ;;  %2041 = vmatprep.subr.bf16.mxu1 %v2326_v63 }
  0xd0   : > { %v672_v53 = vsel %vm657_vm6, %v655_v52, %v2317_v50  ;;  %v673_v54 = vsel %vm657_vm6, %v656_v51, %v2318_v47 }
  0xd1   : > { %v681_v31 = vpack.c.bf16 %v673_v54, %v672_v53  ;;  %2078 = vmatpush3.bf16.msra.mxu0 %v2924_v2 }
  0xd2   : > { %2042 = vmatpush3.bf16.msra.mxu1 %v2326_v63  ;;  %2079 = vmatprep.subr.bf16.mxu0 %v2931_v5 }
  0xd3   : > { %1957 = vmatmul.mubr.msk.bf16.gmra.mrb[20].mxu0 %vm706_vm7, %v679_v33  ;;  %2043 = vmatprep.subr.bf16.mxu1 %v2327_v26 }
  0xd4   : > { %823 = vmatprep.mubr.bf16.mxu0 %v2473_v62 }
  0xd5   : > { %2080 = vmatpush3.bf16.msra.mxu0 %v2931_v5 }
  0xd6   : > { %2044 = vmatpush3.bf16.msra.mxu1 %v2327_v26  ;;  %2081 = vmatprep.subr.bf16.mxu0 %v2938_v1 }
  0xd9   : > { %2082 = vmatpush3.bf16.msra.mxu0 %v2938_v1 }
  0xda   : > { %2083 = vmatprep.subr.bf16.mxu0 %v2945_v6 }
  0xdb   : > { %1958 = vmatmul.mubr.msk.bf16.gmra.mrb[24].mxu0 %vm706_vm7, %v680_v46 }
  0xdc   : > { %833 = vmatprep.mubr.bf16.mxu0 %v2473_v62  ;;  %v2328_v62 = vld [vmem:[%s3407_s3 + $0x18] sm:$0xff]  }
  0xdd   : > { %2045 = vmatprep.subr.bf16.mxu1 %v2328_v62  ;;  %2084 = vmatpush3.bf16.msra.mxu0 %v2945_v6 }
  0xde   : > { %2046 = vmatpush3.bf16.msra.mxu1 %v2328_v62  ;;  %2085 = vmatprep.subr.bf16.mxu0 %v2952_v7 }
  0xdf   : > { %2047 = vmatprep.subr.bf16.mxu1 %v2329_v55 }
  0xe1   : > { %2086 = vmatpush3.bf16.msra.mxu0 %v2952_v7 }
  0xe2   : > { %2048 = vmatpush3.bf16.msra.mxu1 %v2329_v55 }
  0xe3   : > { %1959 = vmatmul.mubr.msk.bf16.gmra.mrb[28].mxu0 %vm706_vm7, %v681_v31  ;;  %2049 = vmatprep.subr.bf16.mxu1 %v2330_v57 }
  0xe6   : > { %2050 = vmatpush3.bf16.msra.mxu1 %v2330_v57 }
  0xe7   : > { %2051 = vmatprep.subr.bf16.mxu1 %v2331_v58 }
  0xea   : > { %2052 = vmatpush3.bf16.msra.mxu1 %v2331_v58 }
  0xeb   : > { %2053 = vmatprep.subr.bf16.mxu1 %v2332_v59 }
  0xee   : > { %2054 = vmatpush3.bf16.msra.mxu1 %v2332_v59 }
  0xef   : > { %2103 = vmatprep.subr.bf16.mxu1 %v2903_v61 }
 0x17e   : > { %v765_v8 = vpop.f32.mrb[0].mxu0 }
 0x17f   : > { %v844_v9 = vmul.f32 %v765_v8, %v765_v8  ;;  %v767_v56 = vpop.f32.mrb[1].mxu0 }
 0x180   : > { %v860_v36 = vmul.f32 %v767_v56, %v767_v56  ;;  %v769_v10 = vpop.f32.mrb[2].mxu0 }
 0x181   : > { %v845_v13 = vmul.f32 %v769_v10, %v769_v10  ;;  %v771_v11 = vpop.f32.mrb[3].mxu0 }
 0x182   : > { %v876_v3 = vadd.f32 %v860_v36, %v844_v9  ;;  %v861_v16 = vmul.f32 %v771_v11, %v771_v11 }
 0x184   : > { %v877_v17 = vadd.f32 %v861_v16, %v845_v13  ;;  %2341 = vrsqrt.f32 %v876_v3  ;;  %vm894_vm8 = vcmp.eq.f32.partialorder %v876_v3, inf  ;;  %v897_v39 = vand.u32 2147483648, %v876_v3 }
 0x185   : > { %vm896_vm10 = vcmp.eq.f32.partialorder %v876_v3, 0.0 }
 0x186   : > { %v775_v18 = vpop.f32.mrb[4].mxu0  ;;  %2343 = vrsqrt.f32 %v877_v17  ;;  %vm901_vm9 = vcmp.eq.f32.partialorder %v877_v17, inf  ;;  %v904_v15 = vand.u32 2147483648, %v877_v17  ;;  %vm903_vm11 = vcmp.eq.f32.partialorder %v877_v17, 0.0 }
 0x187   : > { %v846_v19 = vmul.f32 %v775_v18, %v775_v18  ;;  %v777_v20 = vpop.f32.mrb[5].mxu0 }
 0x188   : > { %v862_v22 = vmul.f32 %v777_v20, %v777_v20  ;;  %v779_v23 = vpop.f32.mrb[6].mxu0 }
 0x189   : > { %v847_v24 = vmul.f32 %v779_v23, %v779_v23  ;;  %v781_v25 = vpop.f32.mrb[7].mxu0 }
 0x18a   : > { %v878_v27 = vadd.f32 %v862_v22, %v846_v19  ;;  %v863_v14 = vmul.f32 %v781_v25, %v781_v25 }
 0x18c   : > { %2345 = vrsqrt.f32 %v878_v27  ;;  %v879_v60 = vadd.f32 %v863_v14, %v847_v24  ;;  %vm908_vm12 = vcmp.eq.f32.partialorder %v878_v27, inf  ;;  %v911_v55 = vand.u32 2147483648, %v878_v27 }
 0x18d   : > { %vm910_vm14 = vcmp.eq.f32.partialorder %v878_v27, 0.0 }
 0x18e   : > { %v2342_v28 = vpop.eup %2341  ;;  %2347 = vrsqrt.f32 %v879_v60  ;;  %v785_v29 = vpop.f32.mrb[8].mxu0  ;;  %vm915_vm13 = vcmp.eq.f32.partialorder %v879_v60, inf  ;;  %v918_v8 = vand.u32 2147483648, %v879_v60  ;;  %vm917_vm15 = vcmp.eq.f32.partialorder %v879_v60, 0.0 }
 0x18f   : > { %v848_v30 = vmul.f32 %v785_v29, %v785_v29  ;;  %v787_v32 = vpop.f32.mrb[9].mxu0  ;;  %v893_v33 = vmul.f32 %v2342_v28, %v876_v3 }
 0x190   : > { %v2344_v34 = vpop.eup %2343  ;;  %v864_v35 = vmul.f32 %v787_v32, %v787_v32  ;;  %v789_v37 = vpop.f32.mrb[10].mxu0 }
 0x191   : > { %v849_v21 = vmul.f32 %v789_v37, %v789_v37  ;;  %v791_v12 = vpop.f32.mrb[11].mxu0  ;;  %v895_v38 = vsel %vm894_vm8, %v876_v3, %v893_v33  ;;  %v900_v40 = vmul.f32 %v2344_v34, %v877_v17 }
 0x192   : > { %v2957_v41 = vadd.f32 %v864_v35, %v848_v30  ;;  %v865_v48 = vmul.f32 %v791_v12, %v791_v12  ;;  %v898_v44 = vsel %vm896_vm10, %v897_v39, %v895_v38 }
 0x193   : > { %v902_v42 = vsel %vm901_vm9, %v877_v17, %v900_v40 }
 0x194   : > { %2349 = vrsqrt.f32 %v2957_v41  ;;  %v881_v43 = vadd.f32 %v865_v48, %v849_v21  ;;  %v905_v45 = vsel %vm903_vm11, %v904_v15, %v902_v42  ;;  %vm922_vm0 = vcmp.eq.f32.partialorder %v2957_v41, inf }
 0x195   : > { %v1004_v46 = vpack.c.bf16 %v905_v45, %v898_v44  ;;  %vm924_vm2 = vcmp.eq.f32.partialorder %v2957_v41, 0.0 }
 0x196   : > { %v2346_v47 = vpop.eup %2345  ;;  %2351 = vrsqrt.f32 %v881_v43  ;;  %v795_v50 = vpop.f32.mrb[12].mxu0  ;;  %vm929_vm1 = vcmp.eq.f32.partialorder %v881_v43, inf  ;;  %v932_v29 = vand.u32 2147483648, %v881_v43  ;;  %vm931_vm3 = vcmp.eq.f32.partialorder %v881_v43, 0.0 }
 0x197   : > { %v850_v51 = vmul.f32 %v795_v50, %v795_v50  ;;  %v797_v52 = vpop.f32.mrb[13].mxu0  ;;  %2055 = vmatprep.mubr.bf16.mxu1 %v1004_v46  ;;  %v907_v53 = vmul.f32 %v2346_v47, %v878_v27 }
 0x198   : > { %v2348_v54 = vpop.eup %2347  ;;  %v866_v31 = vmul.f32 %v797_v52, %v797_v52  ;;  %v799_v49 = vpop.f32.mrb[14].mxu0 }
 0x199   : > { %v851_v63 = vmul.f32 %v799_v49, %v799_v49  ;;  %v801_v26 = vpop.f32.mrb[15].mxu0  ;;  %v909_v62 = vsel %vm908_vm12, %v878_v27, %v907_v53  ;;  %v914_v57 = vmul.f32 %v2348_v54, %v879_v60  ;;  %v925_v27 = vand.u32 2147483648, %v2957_v41 }
 0x19a   : > { %v2960_v58 = vadd.f32 %v866_v31, %v850_v51  ;;  %v867_v59 = vmul.f32 %v801_v26, %v801_v26  ;;  %v912_v36 = vsel %vm910_vm14, %v911_v55, %v909_v62 }
 0x19b   : > { %v916_v9 = vsel %vm915_vm13, %v879_v60, %v914_v57 }
 0x19c   : > { %2353 = vrsqrt.f32 %v2960_v58  ;;  %v2963_v56 = vadd.f32 %v867_v59, %v851_v63  ;;  %v919_v10 = vsel %vm917_vm15, %v918_v8, %v916_v9  ;;  %vm936_vm5 = vcmp.eq.f32.partialorder %v2960_v58, inf }
 0x19d   : > { %v1005_v13 = vpack.c.bf16 %v919_v10, %v912_v36  ;;  %v939_v42 = vand.u32 2147483648, %v2960_v58  ;;  %vm938_vm7 = vcmp.eq.f32.partialorder %v2960_v58, 0.0 }
 0x19e   : > { %v2350_v11 = vpop.eup %2349  ;;  %2355 = vrsqrt.f32 %v2963_v56  ;;  %v805_v3 = vpop.f32.mrb[16].mxu0  ;;  %vm943_vm6 = vcmp.eq.f32.partialorder %v2963_v56, inf  ;;  %v946_v46 = vand.u32 2147483648, %v2963_v56  ;;  %vm945_vm8 = vcmp.eq.f32.partialorder %v2963_v56, 0.0 }
 0x19f   : > { %v852_v16 = vmul.f32 %v805_v3, %v805_v3  ;;  %v807_v17 = vpop.f32.mrb[17].mxu0  ;;  %2056 = vmatmul.mubr.bf16.vlgmr.msra.gmra.mrb[0].mxu1 %v1005_v13  ;;  %v921_v18 = vmul.f32 %v2350_v11, %v2957_v41 }
 0x1a0   : > { %v2352_v19 = vpop.eup %2351  ;;  %v868_v20 = vmul.f32 %v807_v17, %v807_v17  ;;  %v809_v22 = vpop.f32.mrb[18].mxu0  ;;  %2111 = vmatpush3.bf16.msra.mxu1 %v2903_v61 }
 0x1a1   : > { %v853_v23 = vmul.f32 %v809_v22, %v809_v22  ;;  %v811_v24 = vpop.f32.mrb[19].mxu0  ;;  %v923_v25 = vsel %vm922_vm0, %v2957_v41, %v921_v18  ;;  %v928_v14 = vmul.f32 %v2352_v19, %v881_v43  ;;  %2104 = vmatprep.subr.bf16.mxu1 %v2908_v0 }
 0x1a2   : > { %v2972_v60 = vadd.f32 %v868_v20, %v852_v16  ;;  %v869_v28 = vmul.f32 %v811_v24, %v811_v24  ;;  %v926_v32 = vsel %vm924_vm2, %v925_v27, %v923_v25 }
 0x1a3   : > { %v930_v30 = vsel %vm929_vm1, %v881_v43, %v928_v14 }
 0x1a4   : > { %2357 = vrsqrt.f32 %v2972_v60  ;;  %v2976_v61 = vadd.f32 %v869_v28, %v853_v23  ;;  %v933_v33 = vsel %vm931_vm3, %v932_v29, %v930_v30  ;;  %2112 = vmatpush3.bf16.msra.mxu1 %v2908_v0  ;;  %vm950_vm9 = vcmp.eq.f32.partialorder %v2972_v60, inf }
 0x1a5   : > { %v1006_v34 = vpack.c.bf16 %v933_v33, %v926_v32  ;;  %2105 = vmatprep.subr.bf16.mxu1 %v2917_v4  ;;  %v953_v59 = vand.u32 2147483648, %v2972_v60  ;;  %vm952_vm11 = vcmp.eq.f32.partialorder %v2972_v60, 0.0 }
 0x1a6   : > { %v2354_v35 = vpop.eup %2353  ;;  %2359 = vrsqrt.f32 %v2976_v61  ;;  %v815_v37 = vpop.f32.mrb[20].mxu0  ;;  %vm957_vm10 = vcmp.eq.f32.partialorder %v2976_v61, inf  ;;  %v960_v36 = vand.u32 2147483648, %v2976_v61  ;;  %vm959_vm12 = vcmp.eq.f32.partialorder %v2976_v61, 0.0 }
 0x1a7   : > { %v854_v21 = vmul.f32 %v815_v37, %v815_v37  ;;  %v817_v12 = vpop.f32.mrb[21].mxu0  ;;  %2059 = vmatprep.mubr.bf16.mxu1 %v1006_v34  ;;  %v935_v38 = vmul.f32 %v2354_v35, %v2960_v58 }
 0x1a8   : > { %v2356_v39 = vpop.eup %2355  ;;  %v870_v40 = vmul.f32 %v817_v12, %v817_v12  ;;  %v819_v41 = vpop.f32.mrb[22].mxu0  ;;  %2113 = vmatpush3.bf16.msra.mxu1 %v2917_v4 }
 0x1a9   : > { %v855_v0 = vmul.f32 %v819_v41, %v819_v41  ;;  %v821_v48 = vpop.f32.mrb[23].mxu0  ;;  %v937_v15 = vsel %vm936_vm5, %v2960_v58, %v935_v38  ;;  %v942_v43 = vmul.f32 %v2356_v39, %v2963_v56  ;;  %2106 = vmatprep.subr.bf16.mxu1 %v2924_v2 }
 0x1aa   : > { %v2988_v44 = vadd.f32 %v870_v40, %v854_v21  ;;  %v871_v45 = vmul.f32 %v821_v48, %v821_v48  ;;  %v940_v50 = vsel %vm938_vm7, %v939_v42, %v937_v15 }
 0x1ab   : > { %v944_v4 = vsel %vm943_vm6, %v2963_v56, %v942_v43 }
 0x1ac   : > { %2361 = vrsqrt.f32 %v2988_v44  ;;  %v2996_v47 = vadd.f32 %v871_v45, %v855_v0  ;;  %v947_v51 = vsel %vm945_vm8, %v946_v46, %v944_v4  ;;  %2114 = vmatpush3.bf16.msra.mxu1 %v2924_v2  ;;  %vm964_vm13 = vcmp.eq.f32.partialorder %v2988_v44, inf }
 0x1ad   : > { %v1007_v52 = vpack.c.bf16 %v947_v51, %v940_v50  ;;  %2107 = vmatprep.subr.bf16.mxu1 %v2931_v5  ;;  %v967_v14 = vand.u32 2147483648, %v2988_v44  ;;  %vm966_vm15 = vcmp.eq.f32.partialorder %v2988_v44, 0.0 }
 0x1ae   : > { %v2358_v53 = vpop.eup %2357  ;;  %2363 = vrsqrt.f32 %v2996_v47  ;;  %v825_v54 = vpop.f32.mrb[24].mxu0  ;;  %vm971_vm14 = vcmp.eq.f32.partialorder %v2996_v47, inf  ;;  %v974_v30 = vand.u32 2147483648, %v2996_v47  ;;  %vm973_vm0 = vcmp.eq.f32.partialorder %v2996_v47, 0.0 }
 0x1af   : > { %v856_v31 = vmul.f32 %v825_v54, %v825_v54  ;;  %2060 = vmatmul.mubr.bf16.gmra.mrb[4].mxu1 %v1007_v52  ;;  %v827_v49 = vpop.f32.mrb[25].mxu0  ;;  %v949_v63 = vmul.f32 %v2358_v53, %v2972_v60  ;;  %v1173_v53 = vlaneseq }
 0x1b0   : > { %v2360_v26 = vpop.eup %2359  ;;  %v872_v62 = vmul.f32 %v827_v49, %v827_v49  ;;  %v829_v55 = vpop.f32.mrb[26].mxu0  ;;  %2115 = vmatpush3.bf16.msra.mxu1 %v2931_v5  ;;  %v3032_v49 = vstv %s1191_s8 }
 0x1b1   : > { %v857_v2 = vmul.f32 %v829_v55, %v829_v55  ;;  %v831_v57 = vpop.f32.mrb[27].mxu0  ;;  %v951_v58 = vsel %vm950_vm9, %v2972_v60, %v949_v63  ;;  %v956_v8 = vmul.f32 %v2360_v26, %v2976_v61  ;;  %2108 = vmatprep.subr.bf16.mxu1 %v2938_v1  ;;  %v3029_v54 = vshrl.u32 %v1173_v53, 7 }
 0x1b2   : > { %v888_v9 = vadd.f32 %v872_v62, %v856_v31  ;;  %v873_v56 = vmul.f32 %v831_v57, %v831_v57  ;;  %v954_v13 = vsel %vm952_vm11, %v953_v59, %v951_v58 }
 0x1b3   : > { %v958_v5 = vsel %vm957_vm10, %v2976_v61, %v956_v8  ;;  %v1176_v31 = vadd.s32 16, %v3029_v54  ;;  %v1177_v63 = vadd.s32 24, %v3029_v54  ;;  %v1175_v26 = vadd.s32 8, %v3029_v54 }
 0x1b4   : > { %2365 = vrsqrt.f32 %v888_v9  ;;  %v889_v10 = vadd.f32 %v873_v56, %v857_v2  ;;  %v961_v11 = vsel %vm959_vm12, %v960_v36, %v958_v5  ;;  %2116 = vmatpush3.bf16.msra.mxu1 %v2938_v1  ;;  %vm978_vm1 = vcmp.eq.f32.partialorder %v888_v9, inf }
 0x1b5   : > { %v1008_v3 = vpack.c.bf16 %v961_v11, %v954_v13  ;;  %2109 = vmatprep.subr.bf16.mxu1 %v2945_v6  ;;  %v981_v37 = vand.u32 2147483648, %v888_v9  ;;  %vm980_vm2 = vcmp.eq.f32.partialorder %v888_v9, 0.0  ;;  %vm1195_vm10 = vcmp.lt.s32.totalorder %v1176_v31, %v3032_v49 }
 0x1b6   : > { %v2362_v16 = vpop.eup %2361  ;;  %2367 = vrsqrt.f32 %v889_v10  ;;  %v835_v17 = vpop.f32.mrb[28].mxu0  ;;  %vm985_vm3 = vcmp.eq.f32.partialorder %v889_v10, inf  ;;  %v988_v38 = vand.u32 2147483648, %v889_v10  ;;  %vm987_vm5 = vcmp.eq.f32.partialorder %v889_v10, 0.0 }
 0x1b7   : > { %v858_v18 = vmul.f32 %v835_v17, %v835_v17  ;;  %v837_v19 = vpop.f32.mrb[29].mxu0  ;;  %2063 = vmatprep.mubr.bf16.mxu1 %v1008_v3  ;;  %v963_v20 = vmul.f32 %v2362_v16, %v2988_v44  ;;  %vm1193_vm11 = vcmp.lt.s32.totalorder %v3029_v54, %v3032_v49  ;;  %vm1196_vm12 = vcmp.lt.s32.totalorder %v1177_v63, %v3032_v49 }
 0x1b8   : > { %v2364_v22 = vpop.eup %2363  ;;  %v874_v23 = vmul.f32 %v837_v19, %v837_v19  ;;  %v839_v24 = vpop.f32.mrb[30].mxu0  ;;  %2117 = vmatpush3.bf16.msra.mxu1 %v2945_v6  ;;  %v1180_v5 = vadd.s32 48, %v3029_v54  ;;  %v1181_v13 = vadd.s32 56, %v3029_v54  ;;  %v1179_v11 = vadd.s32 40, %v3029_v54 }
 0x1b9   : > { %v859_v25 = vmul.f32 %v839_v24, %v839_v24  ;;  %v841_v1 = vpop.f32.mrb[31].mxu0  ;;  %v965_v27 = vsel %vm964_vm13, %v2988_v44, %v963_v20  ;;  %v970_v60 = vmul.f32 %v2364_v22, %v2996_v47  ;;  %2110 = vmatprep.subr.bf16.mxu1 %v2952_v7  ;;  %vm1194_vm13 = vcmp.lt.s32.totalorder %v1175_v26, %v3032_v49 }
 0x1ba   : > { %v890_v28 = vadd.f32 %v874_v23, %v858_v18  ;;  %v875_v29 = vmul.f32 %v841_v1, %v841_v1  ;;  %v968_v32 = vsel %vm966_vm15, %v967_v14, %v965_v27  ;;  %vm1980_vm15 = vmpackc.low %vm1196_vm12, %vm1195_vm10  ;;  %v1184_v1 = vadd.s32 80, %v3029_v54 }
 0x1bb   : > { %v972_v6 = vsel %vm971_vm14, %v2996_v47, %v970_v60  ;;  %vm1977_vm14 = vmpackc.low %vm1194_vm13, %vm1193_vm11  ;;  %v1182_v27 = vadd.s32 64, %v3029_v54  ;;  %v1185_v14 = vadd.s32 88, %v3029_v54  ;;  %v1183_v60 = vadd.s32 72, %v3029_v54 }
 0x1bc   : > { %2369 = vrsqrt.f32 %v890_v28  ;;  %v891_v61 = vadd.f32 %v875_v29, %v859_v25  ;;  %v975_v33 = vsel %vm973_vm0, %v974_v30, %v972_v6  ;;  %2118 = vmatpush3.bf16.msra.mxu1 %v2952_v7  ;;  %vm992_vm6 = vcmp.eq.f32.partialorder %v890_v28, inf }
 0x1bd   : > { %v1009_v34 = vpack.c.bf16 %v975_v33, %v968_v32  ;;  %v995_v7 = vand.u32 2147483648, %v890_v28  ;;  %vm994_vm7 = vcmp.eq.f32.partialorder %v890_v28, 0.0  ;;  %vm1199_vm0 = vcmp.lt.s32.totalorder %v1180_v5, %v3032_v49 }
 0x1be   : > { %v2366_v35 = vpop.eup %2365  ;;  %2371 = vrsqrt.f32 %v891_v61  ;;  %vm999_vm8 = vcmp.eq.f32.partialorder %v891_v61, inf  ;;  %v1002_v45 = vand.u32 2147483648, %v891_v61  ;;  %vm1001_vm9 = vcmp.eq.f32.partialorder %v891_v61, 0.0 }
 0x1bf   : > { %2064 = vmatmul.mubr.bf16.gmra.mrb[8].mxu1 %v1009_v34  ;;  %v977_v21 = vmul.f32 %v2366_v35, %v888_v9 }
 0x1c0   : > { %v2368_v12 = vpop.eup %2367 }
 0x1c1   : > { %v979_v39 = vsel %vm978_vm1, %v888_v9, %v977_v21  ;;  %v984_v40 = vmul.f32 %v2368_v12, %v889_v10  ;;  %v1188_v21 = vadd.s32 112, %v3029_v54  ;;  %v1186_v12 = vadd.s32 96, %v3029_v54 }
 0x1c2   : > { %v982_v41 = vsel %vm980_vm2, %v981_v37, %v979_v39  ;;  %vm1200_vm2 = vcmp.lt.s32.totalorder %v1181_v13, %v3032_v49  ;;  %v1187_v39 = vadd.s32 104, %v3029_v54 }
 0x1c3   : > { %v986_v0 = vsel %vm985_vm3, %v889_v10, %v984_v40  ;;  %v1178_v10 = vadd.s32 32, %v3029_v54  ;;  %vm1198_vm3 = vcmp.lt.s32.totalorder %v1179_v11, %v3032_v49 }
 0x1c4   : > { %v989_v48 = vsel %vm987_vm5, %v988_v38, %v986_v0  ;;  %v1189_v38 = vadd.s32 120, %v3029_v54 }
 0x1c5   : > { %v1010_v15 = vpack.c.bf16 %v989_v48, %v982_v41  ;;  %vm1197_vm1 = vcmp.lt.s32.totalorder %v1178_v10, %v3032_v49 }
 0x1c6   : > { %v2370_v42 = vpop.eup %2369  ;;  %vm1983_vm5 = vmpackc.low %vm1198_vm3, %vm1197_vm1 }
 0x1c7   : > { %2067 = vmatprep.mubr.bf16.mxu1 %v1010_v15  ;;  %v991_v43 = vmul.f32 %v2370_v42, %v890_v28 }
 0x1c8   : > { %v2372_v44 = vpop.eup %2371 }
 0x1c9   : > { %v993_v46 = vsel %vm992_vm6, %v890_v28, %v991_v43  ;;  %v998_v4 = vmul.f32 %v2372_v44, %v891_v61  ;;  %vm1986_vm6 = vmpackc.low %vm1200_vm2, %vm1199_vm0 }
 0x1ca   : > { %v996_v47 = vsel %vm994_vm7, %v995_v7, %v993_v46  ;;  %vm1203_vm7 = vcmp.lt.s32.totalorder %v1184_v1, %v3032_v49 }
 0x1cb   : > { %v1000_v50 = vsel %vm999_vm8, %v891_v61, %v998_v4  ;;  %vm1201_vm8 = vcmp.lt.s32.totalorder %v1182_v27, %v3032_v49 }
 0x1cc   : > { %v1003_v51 = vsel %vm1001_vm9, %v1002_v45, %v1000_v50  ;;  %vm1204_vm9 = vcmp.lt.s32.totalorder %v1185_v14, %v3032_v49 }
 0x1cd   : > { %v1011_v52 = vpack.c.bf16 %v1003_v51, %v996_v47 }
 0x1cf   : > { %2068 = vmatmul.mubr.bf16.gmra.mrb[12].mxu1 %v1011_v52 }
 0x272   : > { %v2057_v62 = vpop.f32.mrb[0].mxu1 }
 0x273   : > { %v1211_v55 = vsel %vm1195_vm10, %v2057_v62, 0.0  ;;  %v1110_v2 = vpop.f32.mrb[1].mxu1  ;;  %vm1202_vm10 = vcmp.lt.s32.totalorder %v1183_v60, %v3032_v49 }
 0x274   : > { %1227 = vst [vmem:[%s2612_s20 + $0x10] sm:$0xff] %v1211_v55  ;;  %v1209_v57 = vsel %vm1193_vm11, %v1110_v2, 0.0  ;;  %v2058_v58 = vpop.f32.mrb[2].mxu1  ;;  %vm1989_vm11 = vmpackc.low %vm1202_vm10, %vm1201_vm8 }
 0x275   : > { %1225 = vst [vmem:[%s2612_s20] sm:$0xff] %v1209_v57  ;;  %v1212_v59 = vsel %vm1196_vm12, %v2058_v58, 0.0  ;;  %v1981_v8 = vpack.c.bf16 %v2058_v58, %v2057_v62  ;;  %v1113_v9 = vpop.f32.mrb[3].mxu1  ;;  %vm1992_vm12 = vmpackc.low %vm1204_vm9, %vm1203_vm7 }
 0x276   : > { %1228 = vst [vmem:[%s2612_s20 + $0x18] sm:$0xff] %v1212_v59  ;;  %v1210_v56 = vsel %vm1194_vm13, %v1113_v9, 0.0  ;;  %v1978_v36 = vpack.c.bf16 %v1113_v9, %v1110_v2  ;;  %vm1207_vm13 = vcmp.lt.s32.totalorder %v1188_v21, %v3032_v49 }
 0x277   : > { %1226 = vst [vmem:[%s2612_s20 + $0x8] sm:$0xff] %v1210_v56 }
 0x278   : > { %2087 = vmatprep.mubr.msk.bf16.mxu0 %vm1977_vm14, %v1978_v36  ;;  %vm1205_vm14 = vcmp.lt.s32.totalorder %v1186_v12, %v3032_v49 }
 0x279   : > { %2088 = vmatmul.mubr.msk.bf16.vlgmr.msra.gmra.mrb[32].mxu0 %vm1980_vm15, %v1981_v8  ;;  %vm1208_vm15 = vcmp.lt.s32.totalorder %v1189_v38, %v3032_v49 }
 0x282   : > { %v2061_v3 = vpop.f32.mrb[4].mxu1 }
 0x283   : > { %v1215_v16 = vsel %vm1199_vm0, %v2061_v3, 0.0  ;;  %v1126_v17 = vpop.f32.mrb[5].mxu1  ;;  %vm1206_vm0 = vcmp.lt.s32.totalorder %v1187_v39, %v3032_v49 }
 0x284   : > { %1231 = vst [vmem:[%s2612_s20 + $0x30] sm:$0xff] %v1215_v16  ;;  %v1213_v18 = vsel %vm1197_vm1, %v1126_v17, 0.0  ;;  %v2062_v19 = vpop.f32.mrb[6].mxu1  ;;  %vm1995_vm1 = vmpackc.low %vm1206_vm0, %vm1205_vm14 }
 0x285   : > { %1229 = vst [vmem:[%s2612_s20 + $0x20] sm:$0xff] %v1213_v18  ;;  %v1216_v20 = vsel %vm1200_vm2, %v2062_v19, 0.0  ;;  %v1987_v22 = vpack.c.bf16 %v2062_v19, %v2061_v3  ;;  %v1129_v23 = vpop.f32.mrb[7].mxu1  ;;  %vm1998_vm2 = vmpackc.low %vm1208_vm15, %vm1207_vm13 }
 0x286   : > { %1232 = vst [vmem:[%s2612_s20 + $0x38] sm:$0xff] %v1216_v20  ;;  %v1214_v24 = vsel %vm1198_vm3, %v1129_v23, 0.0  ;;  %v1984_v25 = vpack.c.bf16 %v1129_v23, %v1126_v17  ;;  %vm1528_vm3 = vcmask 1041408  }
 0x287   : > { %1230 = vst [vmem:[%s2612_s20 + $0x28] sm:$0xff] %v1214_v24 }
 0x288   : > { %2091 = vmatprep.mubr.msk.bf16.mxu1 %vm1983_vm5, %v1984_v25  ;;  %vm1426_vm5 = vcmask 1040384  }
 0x289   : > { %2092 = vmatmul.mubr.msk.bf16.vlgmr.msra.gmra.mrb[16].mxu1 %vm1986_vm6, %v1987_v22  ;;  %vm1630_vm6 = vcmask 1042432  }
 0x292   : > { %v2065_v28 = vpop.f32.mrb[8].mxu1 }
 0x293   : > { %v1219_v29 = vsel %vm1203_vm7, %v2065_v28, 0.0  ;;  %v1142_v30 = vpop.f32.mrb[9].mxu1 }
 0x294   : > { %1235 = vst [vmem:[%s2612_s20 + $0x50] sm:$0xff] %v1219_v29  ;;  %v1217_v6 = vsel %vm1201_vm8, %v1142_v30, 0.0  ;;  %v2066_v61 = vpop.f32.mrb[10].mxu1 }
 0x295   : > { %1233 = vst [vmem:[%s2612_s20 + $0x40] sm:$0xff] %v1217_v6  ;;  %v1220_v32 = vsel %vm1204_vm9, %v2066_v61, 0.0  ;;  %v1993_v33 = vpack.c.bf16 %v2066_v61, %v2065_v28  ;;  %v1145_v34 = vpop.f32.mrb[11].mxu1 }
 0x296   : > { %1236 = vst [vmem:[%s2612_s20 + $0x58] sm:$0xff] %v1220_v32  ;;  %v1218_v35 = vsel %vm1202_vm10, %v1145_v34, 0.0  ;;  %v1990_v37 = vpack.c.bf16 %v1145_v34, %v1142_v30 }
 0x297   : > { %1234 = vst [vmem:[%s2612_s20 + $0x48] sm:$0xff] %v1218_v35 }
 0x298   : > { %2095 = vmatprep.mubr.msk.bf16.mxu1 %vm1989_vm11, %v1990_v37 }
 0x299   : > { %2096 = vmatmul.mubr.msk.bf16.gmra.mrb[20].mxu1 %vm1992_vm12, %v1993_v33 }
 0x2a2   : > { %v2069_v40 = vpop.f32.mrb[12].mxu1 }
 0x2a3   : > { %v1223_v41 = vsel %vm1207_vm13, %v2069_v40, 0.0  ;;  %v1158_v0 = vpop.f32.mrb[13].mxu1 }
 0x2a4   : > { %1239 = vst [vmem:[%s2612_s20 + $0x70] sm:$0xff] %v1223_v41  ;;  %v1221_v48 = vsel %vm1205_vm14, %v1158_v0, 0.0  ;;  %v2070_v15 = vpop.f32.mrb[14].mxu1 }
 0x2a5   : > { %1237 = vst [vmem:[%s2612_s20 + $0x60] sm:$0xff] %v1221_v48  ;;  %v1224_v42 = vsel %vm1208_vm15, %v2070_v15, 0.0  ;;  %v1999_v7 = vpack.c.bf16 %v2070_v15, %v2069_v40  ;;  %v1161_v43 = vpop.f32.mrb[15].mxu1 }
 0x2a6   : > { %1240 = vst [vmem:[%s2612_s20 + $0x78] sm:$0xff] %v1224_v42  ;;  %v1222_v44 = vsel %vm1206_vm0, %v1161_v43, 0.0  ;;  %v1996_v45 = vpack.c.bf16 %v1161_v43, %v1158_v0 }
 0x2a7   : > { %1238 = vst [vmem:[%s2612_s20 + $0x68] sm:$0xff] %v1222_v44  ;;  %s2379_s20 = scalar_lea.vmem %s2378_s19, 4096 }
 0x2a8   : > { %2099 = vmatprep.mubr.msk.bf16.mxu1 %vm1995_vm1, %v1996_v45  ;;  %p2381_p7 = scmp.lt.s32.totalorder %s2379_s20, %s2373_s17 }
 0x2a9   : > { %2100 = vmatmul.mubr.msk.bf16.gmra.mrb[24].mxu1 %vm1998_vm2, %v1999_v7 }
 0x2aa   : > { %p2382_p9 = por %p2381_p7, %p2380_p6 }
 0x2ac   : > { %p2383_p10 = pnand %p2382_p9, %p2376_p5 }
 0x34c   : > { %v3105_v46 = vpop.f32.mrb[32].mxu0 }
 0x34d   : > { %v3107_v4 = vpop.f32.mrb[33].mxu0  ;;  %v1430_v47 = vrot.slane %v3105_v46, 7  ;;  %v1532_v50 = vrot.slane %v3105_v46, 6  ;;  %v1634_v54 = vrot.slane %v3105_v46, 5 }
 0x34e   : > { %v3111_v51 = vpop.f32.mrb[34].mxu0  ;;  %v1529_v52 = vrot.slane %v3107_v4, 6  ;;  %v1427_v53 = vrot.slane %v3107_v4, 7  ;;  %v1631_v57 = vrot.slane %v3107_v4, 5 }
 0x34f   : > { %v1432_v31 = vrot.slane %v3111_v51, 7  ;;  %v1534_v49 = vrot.slane %v3111_v51, 6  ;;  %v1636_v63 = vrot.slane %v3111_v51, 5  ;;  %v3119_v26 = vpop.f32.mrb[35].mxu0 }
 0x350   : > { %v1428_v62 = vrot.slane %v3119_v26, 7  ;;  %v1530_v55 = vrot.slane %v3119_v26, 6  ;;  %v1632_v2 = vrot.slane %v3119_v26, 5  ;;  %1560 = vrot.lane.b32.xlu1 %v1529_v52, %s2474_s24  ;;  %1458 = vrot.lane.b32.xlu0 %v1427_v53, %s2475_s9 }
 0x351   : > { %v1535_v58 = vsel %vm1528_vm3, %v1532_v50, %v1534_v49  ;;  %v1433_v59 = vsel %vm1426_vm5, %v1430_v47, %v1432_v31  ;;  %v1637_v8 = vsel %vm1630_vm6, %v1634_v54, %v1636_v63 }
 0x352   : > { %v1431_v9 = vsel %vm1426_vm5, %v1428_v62, %v1430_v47  ;;  %v1531_v56 = vsel %vm1528_vm3, %v1529_v52, %v1530_v55  ;;  %v1635_v36 = vsel %vm1630_vm6, %v1632_v2, %v1634_v54  ;;  %v1429_v5 = vsel %vm1426_vm5, %v1427_v53, %v1428_v62 }
 0x353   : > { %v1533_v10 = vsel %vm1528_vm3, %v1530_v55, %v1532_v50  ;;  %v1633_v13 = vsel %vm1630_vm6, %v1631_v57, %v1632_v2 }
 0x354   : > { %1662 = vrot.lane.b32.xlu1 %v1631_v57, %s2476_s12  ;;  %1566 = vrot.lane.b32.xlu0 %v1535_v58, %s2474_s24 }
 0x358   : > { %1464 = vrot.lane.b32.xlu1 %v1433_v59, %s2475_s9  ;;  %1462 = vrot.lane.b32.xlu0 %v1431_v9, %s2475_s9 }
 0x35c   : > { %1668 = vrot.lane.b32.xlu1 %v1637_v8, %s2476_s12  ;;  %1562 = vrot.lane.b32.xlu0 %v1531_v56, %s2474_s24  ;;  %v3142_v11 = vpop.f32.mrb[16].mxu1 }
 0x35d   : > { %v1438_v3 = vrot.slane %v3142_v11, 7  ;;  %v3145_v16 = vpop.f32.mrb[17].mxu1  ;;  %v1540_v17 = vrot.slane %v3142_v11, 6  ;;  %v1642_v23 = vrot.slane %v3142_v11, 5 }
 0x35e   : > { %v1434_v18 = vrot.slane %v3145_v16, 7  ;;  %v1536_v19 = vrot.slane %v3145_v16, 6  ;;  %v1638_v20 = vrot.slane %v3145_v16, 5  ;;  %v3151_v22 = vpop.f32.mrb[18].mxu1 }
 0x35f   : > { %v1440_v24 = vrot.slane %v3151_v22, 7  ;;  %v1542_v25 = vrot.slane %v3151_v22, 6  ;;  %v1644_v1 = vrot.slane %v3151_v22, 5  ;;  %v3157_v27 = vpop.f32.mrb[19].mxu1 }
 0x360   : > { %v1436_v14 = vrot.slane %v3157_v27, 7  ;;  %v1538_v60 = vrot.slane %v3157_v27, 6  ;;  %v1640_v28 = vrot.slane %v3157_v27, 5  ;;  %1666 = vrot.lane.b32.xlu0 %v1635_v36, %s2476_s12  ;;  %1460 = vrot.lane.b32.xlu1 %v1429_v5, %s2475_s9  ;;  %v1435_v29 = vsel %vm1426_vm5, %v1432_v31, %v1434_v18 }
 0x361   : > { %v1639_v30 = vsel %vm1630_vm6, %v1636_v63, %v1638_v20  ;;  %v1537_v6 = vsel %vm1528_vm3, %v1534_v49, %v1536_v19  ;;  %v1543_v61 = vsel %vm1528_vm3, %v1540_v17, %v1542_v25  ;;  %v1441_v32 = vsel %vm1426_vm5, %v1438_v3, %v1440_v24 }
 0x362   : > { %v1439_v33 = vsel %vm1426_vm5, %v1436_v14, %v1438_v3  ;;  %v1645_v34 = vsel %vm1630_vm6, %v1642_v23, %v1644_v1  ;;  %v1539_v35 = vsel %vm1528_vm3, %v1536_v19, %v1538_v60  ;;  %v1643_v37 = vsel %vm1630_vm6, %v1640_v28, %v1642_v23 }
 0x363   : > { %v1437_v21 = vsel %vm1426_vm5, %v1434_v18, %v1436_v14  ;;  %v1541_v12 = vsel %vm1528_vm3, %v1538_v60, %v1540_v17  ;;  %v1641_v38 = vsel %vm1630_vm6, %v1638_v20, %v1640_v28 }
 0x364   : > { %1564 = vrot.lane.b32.xlu1 %v1533_v10, %s2474_s24  ;;  %1466 = vrot.lane.b32.xlu0 %v1435_v29, %s2475_s9 }
 0x368   : > { %1664 = vrot.lane.b32.xlu1 %v1633_v13, %s2476_s12  ;;  %1670 = vrot.lane.b32.xlu0 %v1639_v30, %s2476_s12 }
 0x36c   : > { %1568 = vrot.lane.b32.xlu1 %v1537_v6, %s2474_s24  ;;  %1574 = vrot.lane.b32.xlu0 %v1543_v61, %s2474_s24  ;;  %v3182_v39 = vpop.f32.mrb[20].mxu1 }
 0x36d   : > { %v1446_v40 = vrot.slane %v3182_v39, 7  ;;  %v3185_v41 = vpop.f32.mrb[21].mxu1  ;;  %v1548_v0 = vrot.slane %v3182_v39, 6  ;;  %v1650_v43 = vrot.slane %v3182_v39, 5 }
 0x36e   : > { %v1442_v48 = vrot.slane %v3185_v41, 7  ;;  %v1544_v15 = vrot.slane %v3185_v41, 6  ;;  %v1646_v42 = vrot.slane %v3185_v41, 5  ;;  %v3191_v7 = vpop.f32.mrb[22].mxu1 }
 0x36f   : > { %v1448_v44 = vrot.slane %v3191_v7, 7  ;;  %v1550_v45 = vrot.slane %v3191_v7, 6  ;;  %v1652_v47 = vrot.slane %v3191_v7, 5  ;;  %v3197_v50 = vpop.f32.mrb[23].mxu1 }
 0x370   : > { %v1444_v52 = vrot.slane %v3197_v50, 7  ;;  %v1546_v53 = vrot.slane %v3197_v50, 6  ;;  %v1648_v54 = vrot.slane %v3197_v50, 5  ;;  %1472 = vrot.lane.b32.xlu1 %v1441_v32, %s2475_s9  ;;  %1470 = vrot.lane.b32.xlu0 %v1439_v33, %s2475_s9  ;;  %v1443_v31 = vsel %vm1426_vm5, %v1440_v24, %v1442_v48 }
 0x371   : > { %v1647_v49 = vsel %vm1630_vm6, %v1644_v1, %v1646_v42  ;;  %v1545_v63 = vsel %vm1528_vm3, %v1542_v25, %v1544_v15  ;;  %v1551_v62 = vsel %vm1528_vm3, %v1548_v0, %v1550_v45  ;;  %v1449_v55 = vsel %vm1426_vm5, %v1446_v40, %v1448_v44 }
 0x372   : > { %v1447_v2 = vsel %vm1426_vm5, %v1444_v52, %v1446_v40  ;;  %v1653_v57 = vsel %vm1630_vm6, %v1650_v43, %v1652_v47  ;;  %v1547_v58 = vsel %vm1528_vm3, %v1544_v15, %v1546_v53  ;;  %v1651_v59 = vsel %vm1630_vm6, %v1648_v54, %v1650_v43 }
 0x373   : > { %v1445_v8 = vsel %vm1426_vm5, %v1442_v48, %v1444_v52  ;;  %v1549_v9 = vsel %vm1528_vm3, %v1546_v53, %v1548_v0  ;;  %v1649_v56 = vsel %vm1630_vm6, %v1646_v42, %v1648_v54 }
 0x374   : > { %1676 = vrot.lane.b32.xlu1 %v1645_v34, %s2476_s12  ;;  %1570 = vrot.lane.b32.xlu0 %v1539_v35, %s2474_s24 }
 0x378   : > { %1674 = vrot.lane.b32.xlu0 %v1643_v37, %s2476_s12  ;;  %1468 = vrot.lane.b32.xlu1 %v1437_v21, %s2475_s9 }
 0x37c   : > { %1572 = vrot.lane.b32.xlu1 %v1541_v12, %s2474_s24  ;;  %1474 = vrot.lane.b32.xlu0 %v1443_v31, %s2475_s9  ;;  %v3222_v36 = vpop.f32.mrb[24].mxu1 }
 0x37d   : > { %v1454_v5 = vrot.slane %v3222_v36, 7  ;;  %v3225_v10 = vpop.f32.mrb[25].mxu1  ;;  %v1556_v13 = vrot.slane %v3222_v36, 6  ;;  %v1658_v20 = vrot.slane %v3222_v36, 5 }
 0x37e   : > { %v1450_v3 = vrot.slane %v3225_v10, 7  ;;  %v1552_v17 = vrot.slane %v3225_v10, 6  ;;  %v1654_v18 = vrot.slane %v3225_v10, 5  ;;  %v3231_v19 = vpop.f32.mrb[26].mxu1 }
 0x37f   : > { %v1660_v23 = vrot.slane %v3231_v19, 5  ;;  %v3235_v24 = vpop.f32.mrb[27].mxu1  ;;  %v1456_v25 = vrot.slane %v3231_v19, 7  ;;  %v1558_v1 = vrot.slane %v3231_v19, 6 }
 0x380   : > { %v1452_v14 = vrot.slane %v3235_v24, 7  ;;  %v1554_v60 = vrot.slane %v3235_v24, 6  ;;  %v1656_v28 = vrot.slane %v3235_v24, 5  ;;  %1672 = vrot.lane.b32.xlu1 %v1641_v38, %s2476_s12  ;;  %1678 = vrot.lane.b32.xlu0 %v1647_v49, %s2476_s12  ;;  %v1451_v29 = vsel %vm1426_vm5, %v1448_v44, %v1450_v3 }
 0x381   : > { %v1553_v30 = vsel %vm1528_vm3, %v1550_v45, %v1552_v17  ;;  %v1655_v6 = vsel %vm1630_vm6, %v1652_v47, %v1654_v18  ;;  %v1457_v61 = vsel %vm1426_vm5, %v1454_v5, %v1456_v25  ;;  %v1559_v32 = vsel %vm1528_vm3, %v1556_v13, %v1558_v1 }
 0x382   : > { %v1453_v33 = vsel %vm1426_vm5, %v1450_v3, %v1452_v14  ;;  %v1455_v34 = vsel %vm1426_vm5, %v1452_v14, %v1454_v5  ;;  %v1557_v35 = vsel %vm1528_vm3, %v1554_v60, %v1556_v13  ;;  %v1555_v37 = vsel %vm1528_vm3, %v1552_v17, %v1554_v60 }
 0x383   : > { %v1657_v21 = vsel %vm1630_vm6, %v1654_v18, %v1656_v28  ;;  %v1659_v12 = vsel %vm1630_vm6, %v1656_v28, %v1658_v20  ;;  %v1661_v38 = vsel %vm1630_vm6, %v1658_v20, %v1660_v23 }
 0x384   : > { %1576 = vrot.lane.b32.xlu1 %v1545_v63, %s2474_s24  ;;  %1582 = vrot.lane.b32.xlu0 %v1551_v62, %s2474_s24 }
 0x388   : > { %1480 = vrot.lane.b32.xlu1 %v1449_v55, %s2475_s9  ;;  %1478 = vrot.lane.b32.xlu0 %v1447_v2, %s2475_s9 }
 0x38c   : > { %1684 = vrot.lane.b32.xlu1 %v1653_v57, %s2476_s12  ;;  %1578 = vrot.lane.b32.xlu0 %v1547_v58, %s2474_s24 }
 0x390   : > { %1682 = vrot.lane.b32.xlu0 %v1651_v59, %s2476_s12  ;;  %1476 = vrot.lane.b32.xlu1 %v1445_v8, %s2475_s9 }
 0x394   : > { %1580 = vrot.lane.b32.xlu1 %v1549_v9, %s2474_s24  ;;  %1482 = vrot.lane.b32.xlu0 %v1451_v29, %s2475_s9 }
 0x398   : > { %1680 = vrot.lane.b32.xlu1 %v1649_v56, %s2476_s12  ;;  %1490 = vrot.lane.b32.xlu0 %v1456_v25, %s2475_s9 }
 0x39c   : > { %1584 = vrot.lane.b32.xlu1 %v1553_v30, %s2474_s24  ;;  %1592 = vrot.lane.b32.xlu0 %v1558_v1, %s2474_s24 }
 0x3a0   : > { %1686 = vrot.lane.b32.xlu0 %v1655_v6, %s2476_s12  ;;  %1488 = vrot.lane.b32.xlu1 %v1457_v61, %s2475_s9 }
 0x3a4   : > { %1590 = vrot.lane.b32.xlu0 %v1559_v32, %s2474_s24  ;;  %1484 = vrot.lane.b32.xlu1 %v1453_v33, %s2475_s9 }
 0x3a8   : > { %1486 = vrot.lane.b32.xlu0 %v1455_v34, %s2475_s9  ;;  %1588 = vrot.lane.b32.xlu1 %v1557_v35, %s2474_s24 }
 0x3ac   : > { %1586 = vrot.lane.b32.xlu0 %v1555_v37, %s2474_s24  ;;  %1688 = vrot.lane.b32.xlu1 %v1657_v21, %s2476_s12 }
 0x3ad   : > { %2386 = shalt.err (!%p2383_p10)
}
 0x3ae   : > { %s2387_s29 = scalar_lea.hbm %s3283_s11, 2048  ;;  %s2391_s8 = scalar_lea.hbm %s3409_s5, 16384 }
 0x3af   : > { %p2388_p11 = scmp.ne.s32.totalorder %s3283_s11, %s2387_s29  ;;  %p2392_p0 = scmp.lt.u32.totalorder %s3283_s11, %s3409_s5 }
 0x3b0   : > { %p2393_p1 = scmp.lt.u32.totalorder %s2391_s8, %s2387_s29  ;;  %p2395_p4 = scmp.lt.u32.totalorder %s2387_s29, %s3283_s11 }
 0x3b1   : > { %p2389_p12 = pnand %p2388_p11, %p2565_p3 }
 0x3b2   : > { %p2394_p2 = por %p2393_p1, %p2392_p0 }
 0x3b3   : > { %p2390_p13 = pneg %p2389_p12 }
 0x3b4   : > { %p2396_p5 = por %p2395_p4, %p2394_p2 }
 0x3b6   : > { %p2397_p6 = pnand %p2396_p5, %p2390_p13 }
 0x3b8   : > { %2400 = shalt.err (!%p2397_p6)
}
 0x3b9   : > { %s2478_s13 = smov 128   ;;  %1690 = vrot.lane.b32.xlu0 %v1659_v12, %s2476_s12  ;;  %1692 = vrot.lane.b32.xlu1 %v1661_v38, %s2476_s12  ;;  %v1731_v42 = vld [vmem:[#allocation2] sm:$0x7]  ;;  %vm1765_vm7 = vcmask 59392  }
 0x3ba   : > { %2119 = dma.vmem_to_hbm [thread:$0]  (%p2565_p3), %s3286_s15, 2048, %s3283_s11, %s3292_s16, %s2478_s13, %s2478_s13, %s2470_s21   ;;  %v1732_v52 = vsel %vm1630_vm6, %v1731_v42, 0.0 }
 0x3bd   : > { %1694 = vrot.lane.b32.xlu0 %v1660_v23, %s2476_s12 }
 0x3c2   : > { %v1561_v40 = vpop.permute.xlu1 %1560  ;;  %v1459_v0 = vpop.permute.xlu0 %1458 }
 0x3c3   : > { %v1509_v48 = vsel %vm1426_vm5, 0.0, %v1459_v0  ;;  %v1611_v43 = vsel %vm1528_vm3, 0.0, %v1561_v40 }
 0x3c4   : > { %v1511_v15 = vadd.f32 %v1509_v48, %v3107_v4 }
 0x3c6   : > { %v1663_v44 = vpop.permute.xlu1 %1662  ;;  %v1613_v45 = vadd.f32 %v1611_v43, %v1511_v15  ;;  %v1567_v47 = vpop.permute.xlu0 %1566 }
 0x3c7   : > { %v1713_v53 = vsel %vm1630_vm6, 0.0, %v1663_v44 }
 0x3c8   : > { %v1714_v54 = vadd.f32 %v1713_v53, %v1613_v45 }
 0x3ca   : > { %v1733_v31 = vadd.f32 %v1732_v52, %v1714_v54  ;;  %v1465_v49 = vpop.permute.xlu1 %1464  ;;  %v1463_v63 = vpop.permute.xlu0 %1462 }
 0x3cb   : > { %v1514_v62 = vadd.f32 %v3111_v51, %v1465_v49  ;;  %v1513_v8 = vadd.f32 %v3105_v46, %v1463_v63 }
 0x3cc   : > { %1749 = vst.msk [vmem:[%s2604_s26] sm:$0xff] %vm623_vm4, %v1733_v31 }
 0x3cd   : > { %v1616_v4 = vadd.f32 %v1567_v47, %v1514_v62 }
 0x3ce   : > { %v1669_v55 = vpop.permute.xlu1 %1668  ;;  %v1563_v2 = vpop.permute.xlu0 %1562 }
 0x3cf   : > { %v1717_v57 = vadd.f32 %v1669_v55, %v1616_v4 }
 0x3d1   : > { %1752 = vst.msk [vmem:[%s2604_s26 + $0x18] sm:$0xff] %vm623_vm4, %v1717_v57 }
 0x3d2   : > { %v1667_v58 = vpop.permute.xlu0 %1666  ;;  %v1461_v59 = vpop.permute.xlu1 %1460 }
 0x3d3   : > { %v1512_v9 = vadd.f32 %v1461_v59, %v3119_v26 }
 0x3d5   : > { %v1614_v3 = vadd.f32 %v1563_v2, %v1512_v9 }
 0x3d6   : > { %v1565_v56 = vpop.permute.xlu1 %1564  ;;  %v1467_v5 = vpop.permute.xlu0 %1466 }
 0x3d7   : > { %v1615_v51 = vadd.f32 %v1565_v56, %v1513_v8  ;;  %v1515_v23 = vadd.f32 %v1467_v5, %v3145_v16 }
 0x3d9   : > { %v1716_v13 = vadd.f32 %v1667_v58, %v1615_v51 }
 0x3da   : > { %v1665_v17 = vpop.permute.xlu1 %1664  ;;  %v1671_v18 = vpop.permute.xlu0 %1670 }
 0x3db   : > { %1751 = vst.msk [vmem:[%s2604_s26 + $0x10] sm:$0xff] %vm623_vm4, %v1716_v13  ;;  %v1715_v20 = vadd.f32 %v1665_v17, %v1614_v3 }
 0x3dd   : > { %1750 = vst.msk [vmem:[%s2604_s26 + $0x8] sm:$0xff] %vm623_vm4, %v1715_v20 }
 0x3de   : > { %v1569_v25 = vpop.permute.xlu1 %1568  ;;  %v1575_v46 = vpop.permute.xlu0 %1574 }
 0x3df   : > { %v1617_v1 = vadd.f32 %v1569_v25, %v1515_v23 }
 0x3e1   : > { %v1718_v26 = vadd.f32 %v1671_v18, %v1617_v1 }
 0x3e2   : > { %v1473_v14 = vpop.permute.xlu1 %1472  ;;  %v1471_v60 = vpop.permute.xlu0 %1470 }
 0x3e3   : > { %1753 = vst.msk [vmem:[%s2604_s26 + $0x20] sm:$0xff] %vm623_vm4, %v1718_v26  ;;  %v1518_v28 = vadd.f32 %v3151_v22, %v1473_v14  ;;  %v1517_v33 = vadd.f32 %v3142_v11, %v1471_v60 }
 0x3e5   : > { %v1620_v29 = vadd.f32 %v1575_v46, %v1518_v28 }
 0x3e6   : > { %v1677_v30 = vpop.permute.xlu1 %1676  ;;  %v1571_v6 = vpop.permute.xlu0 %1570 }
 0x3e7   : > { %v1721_v61 = vadd.f32 %v1677_v30, %v1620_v29 }
 0x3e9   : > { %1756 = vst.msk [vmem:[%s2604_s26 + $0x38] sm:$0xff] %vm623_vm4, %v1721_v61 }
 0x3ea   : > { %v1675_v16 = vpop.permute.xlu0 %1674  ;;  %v1469_v32 = vpop.permute.xlu1 %1468 }
 0x3eb   : > { %v1516_v34 = vadd.f32 %v1469_v32, %v3157_v27 }
 0x3ed   : > { %v1618_v22 = vadd.f32 %v1571_v6, %v1516_v34 }
 0x3ee   : > { %v1573_v35 = vpop.permute.xlu1 %1572  ;;  %v1475_v37 = vpop.permute.xlu0 %1474 }
 0x3ef   : > { %v1619_v21 = vadd.f32 %v1573_v35, %v1517_v33  ;;  %v1519_v48 = vadd.f32 %v1475_v37, %v3185_v41 }
 0x3f1   : > { %v1720_v12 = vadd.f32 %v1675_v16, %v1619_v21 }
 0x3f2   : > { %v1673_v38 = vpop.permute.xlu1 %1672  ;;  %v1679_v40 = vpop.permute.xlu0 %1678 }
 0x3f3   : > { %1755 = vst.msk [vmem:[%s2604_s26 + $0x30] sm:$0xff] %vm623_vm4, %v1720_v12  ;;  %v1719_v0 = vadd.f32 %v1673_v38, %v1618_v22 }
 0x3f5   : > { %1754 = vst.msk [vmem:[%s2604_s26 + $0x28] sm:$0xff] %vm623_vm4, %v1719_v0 }
 0x3f6   : > { %v1577_v15 = vpop.permute.xlu1 %1576  ;;  %v1583_v11 = vpop.permute.xlu0 %1582 }
 0x3f7   : > { %v1621_v42 = vadd.f32 %v1577_v15, %v1519_v48 }
 0x3f9   : > { %v1722_v27 = vadd.f32 %v1679_v40, %v1621_v42 }
 0x3fa   : > { %v1481_v43 = vpop.permute.xlu1 %1480  ;;  %v1479_v44 = vpop.permute.xlu0 %1478 }
 0x3fb   : > { %1757 = vst.msk [vmem:[%s2604_s26 + $0x40] sm:$0xff] %vm623_vm4, %v1722_v27  ;;  %v1522_v45 = vadd.f32 %v3191_v7, %v1481_v43  ;;  %v1521_v49 = vadd.f32 %v3182_v39, %v1479_v44 }
 0x3fd   : > { %v1624_v47 = vadd.f32 %v1583_v11, %v1522_v45 }
 0x3fe   : > { %v1685_v52 = vpop.permute.xlu1 %1684  ;;  %v1579_v53 = vpop.permute.xlu0 %1578 }
 0x3ff   : > { %v1725_v54 = vadd.f32 %v1685_v52, %v1624_v47 }
 0x401   : > { %1760 = vst.msk [vmem:[%s2604_s26 + $0x58] sm:$0xff] %vm623_vm4, %v1725_v54 }
 0x402   : > { %v1683_v41 = vpop.permute.xlu0 %1682  ;;  %v1477_v31 = vpop.permute.xlu1 %1476 }
 0x403   : > { %v1520_v63 = vadd.f32 %v1477_v31, %v3197_v50 }
 0x405   : > { %v1622_v7 = vadd.f32 %v1579_v53, %v1520_v63 }
 0x406   : > { %v1581_v62 = vpop.permute.xlu1 %1580  ;;  %v1483_v4 = vpop.permute.xlu0 %1482 }
 0x407   : > { %v1623_v55 = vadd.f32 %v1581_v62, %v1521_v49  ;;  %v1523_v56 = vadd.f32 %v1483_v4, %v3225_v10 }
 0x409   : > { %v1724_v2 = vadd.f32 %v1683_v41, %v1623_v55 }
 0x40a   : > { %v1681_v57 = vpop.permute.xlu1 %1680  ;;  %v1491_v58 = vpop.permute.xlu0 %1490 }
 0x40b   : > { %1759 = vst.msk [vmem:[%s2604_s26 + $0x50] sm:$0xff] %vm623_vm4, %v1724_v2  ;;  %v1723_v59 = vadd.f32 %v1681_v57, %v1622_v7 }
 0x40d   : > { %1758 = vst.msk [vmem:[%s2604_s26 + $0x48] sm:$0xff] %vm623_vm4, %v1723_v59 }
 0x40e   : > { %v1585_v8 = vpop.permute.xlu1 %1584  ;;  %v1593_v9 = vpop.permute.xlu0 %1592 }
 0x40f   : > { %v1625_v39 = vadd.f32 %v1585_v8, %v1523_v56  ;;  %v1612_v28 = vsel %vm1528_vm3, %v1593_v9, 0.0 }
 0x412   : > { %v1687_v5 = vpop.permute.xlu0 %1686  ;;  %v1489_v50 = vpop.permute.xlu1 %1488 }
 0x413   : > { %v1726_v51 = vadd.f32 %v1687_v5, %v1625_v39  ;;  %v1526_v10 = vadd.f32 %v3231_v19, %v1489_v50 }
 0x415   : > { %1761 = vst.msk [vmem:[%s2604_s26 + $0x60] sm:$0xff] %vm623_vm4, %v1726_v51 }
 0x416   : > { %v1591_v13 = vpop.permute.xlu0 %1590  ;;  %v1485_v3 = vpop.permute.xlu1 %1484 }
 0x417   : > { %v1524_v20 = vadd.f32 %v1485_v3, %v3235_v24  ;;  %v1628_v26 = vadd.f32 %v1591_v13, %v1526_v10 }
 0x41a   : > { %v1487_v17 = vpop.permute.xlu0 %1486  ;;  %v1589_v18 = vpop.permute.xlu1 %1588 }
 0x41b   : > { %v1525_v23 = vadd.f32 %v3222_v36, %v1487_v17  ;;  %v1510_v36 = vsel %vm1426_vm5, %v1491_v58, 0.0 }
 0x41c   : > { %v1629_v61 = vadd.f32 %v1612_v28, %v1510_v36 }
 0x41d   : > { %v1627_v14 = vadd.f32 %v1589_v18, %v1525_v23 }
 0x41e   : > { %v1587_v25 = vpop.permute.xlu0 %1586  ;;  %v1689_v46 = vpop.permute.xlu1 %1688 }
 0x41f   : > { %v1626_v1 = vadd.f32 %v1587_v25, %v1524_v20 }
 0x421   : > { %v1727_v60 = vadd.f32 %v1689_v46, %v1626_v1 }
 0x423   : > { %1762 = vst.msk [vmem:[%s2604_s26 + $0x68] sm:$0xff] %vm623_vm4, %v1727_v60 }
 0x42b   : > { %v1691_v29 = vpop.permute.xlu0 %1690  ;;  %v1693_v30 = vpop.permute.xlu1 %1692 }
 0x42c   : > { %v1728_v6 = vadd.f32 %v1691_v29, %v1627_v14  ;;  %v1729_v24 = vadd.f32 %v1693_v30, %v1628_v26 }
 0x42e   : > { %1763 = vst.msk [vmem:[%s2604_s26 + $0x70] sm:$0xff] %vm623_vm4, %v1728_v6  ;;  %1764 = vst.msk [vmem:[%s2604_s26 + $0x78] sm:$0xff] %vm623_vm4, %v1729_v24 }
 0x42f   : > { %v1695_v19 = vpop.permute.xlu0 %1694 }
 0x430   : > { %v1730_v16 = vadd.f32 %v1695_v19, %v1629_v61 }
 0x432   : > { %1766 = vst.msk [vmem:[#allocation2] sm:$0x7] %vm1765_vm7, %v1730_v16 }
 0x433 PF: > { %s3433_s10 = sld [smem:[#allocation10_spill]]  ;;  %s3434_s21 = sld [smem:[#allocation6_spill]] }
 0x439   : > { %p2125_p3 = scmp.ge.s32.totalorder %s3433_s10, 2  ;;  %s1811_s14 = sand.u32 1, %s3434_s21  }
 0x43a   : > { %s1812_s23 = scalar_lea.sflag [#allocation4], %s1811_s14 }
 0x43b   : > { %p2122_p7 = pnand %p2125_p3, %p2574_p8 }
 0x43d   : > { %2434 = dma.done.wait (!%p2122_p7), %s1812_s23, 2048  }
 0x43e   : > { %2436 = vsyncadd (!%p2122_p7), %s1812_s23, 4294965248  ;;  %s20_s28 = sadd.s32 1, %s3433_s10   ;;  %s3436_s26 = sld [smem:[#allocation7_spill]] }
 0x43f   : > { %p17_p9 = scmp.ge.s32.totalorder %s20_s28, 10   ;;  %s3437_s23 = sld [smem:[#allocation14_spill]] }
 0x440   : > { %s3438_s24 = sld [smem:[#allocation8_spill]]  ;;  %s3439_s25 = sld [smem:[#allocation9_spill]] }
 0x441   : > { %s3440_s27 = sld [smem:[#allocation11_spill]]  ;;  %s3441_s7 = sld [smem:[#allocation12_spill]] }
 0x442   : > { %s3442_s21 = smov %s2443_s22  ;;  %19 = sbr.rel (!%p17_p9) target bundleno = 5 (0x5), region = 94 }
 0x444   : > { %s3443_s22 = smov %s3436_s26 }
 0x447   : > { %s3444_s26 = smov %s3440_s27  ;;  %s3445_s27 = smov %s3441_s7 }
 0x449   :  { %1829 = vsyncpa [#allocation4], 1 }
 0x44a   :  { %1831 = vsyncpa [#allocation4 + $0x1], 1 }

</bundles_post_ra>
